<compile_context>
chip_gen: v7x
topology: tpu7x:2x2x1
jax: 0.10.0
libtpu: 0.0.40
codegen_flags: <defaults>
</compile_context>

<pallas_src>
import jax
import jax.numpy as jnp
from jax.experimental import pallas as pl
from jax.experimental.pallas import tpu as pltpu

F_PAD = 128      # lane-pad conv filter count
NCLS_PAD = 128   # lane-pad classifier output (lane-dense stores)


# ----------------------------------------------------------------------------
# Pallas kernel: one spatial row-tile per grid step.
#   conv (9 accumulated matmuls over shifted taps) + bias + ReLU
#   -> partial spatial sum into a VMEM accumulator
#   -> at the last grid step: FC matmul + bias -> logits.
# ----------------------------------------------------------------------------
def _classifier_kernel(xt_ref, wc_ref, bc_ref, wf_ref, bf_ref, out_ref,
                       pool_acc):
    # xt_ref  : [B, TH+2, W+2, C] bf16  padded NHWC row-tile (1-row halo)
    # wc_ref  : [9, C, F_PAD]     bf16  per-tap conv weights (kh, kw order)
    # bc_ref  : [1, F_PAD]        f32   conv bias (zero-padded)
    # wf_ref  : [F_PAD, NCLS_PAD] bf16  fc weight with 1/HW pool scale folded in
    # bf_ref  : [1, NCLS_PAD]     f32   fc bias (zero-padded)
    # out_ref : [B, NCLS_PAD]     f32   padded logits
    # pool_acc: [B, F_PAD]        f32   running spatial sum of ReLU'd features
    t = pl.program_id(0)

    @pl.when(t == 0)
    def _():
        pool_acc[...] = jnp.zeros_like(pool_acc)

    B, th_p2, w_p2, C = xt_ref.shape
    TH, W = th_p2 - 2, w_p2 - 2
    f_pad = wc_ref.shape[-1]

    xt = xt_ref[...]                                        # bf16 tile

    # Convolution as 9 accumulated tall 2-D matmuls (bf16 in, f32 accum).
    acc = jnp.zeros((B * TH * W, f_pad), jnp.float32)
    for di in range(3):
        for dj in range(3):
            tap = xt[:, di:di + TH, dj:dj + W, :].reshape(B * TH * W, C)
            acc = acc + jnp.dot(tap, wc_ref[di * 3 + dj],
                                preferred_element_type=jnp.float32)

    # Bias + ReLU in f32 on the VPU, then partial spatial sum for the pool.
    feat = jnp.maximum(acc + bc_ref[...], 0.0)              # [B*TH*W, F_PAD]
    pool_acc[...] += jnp.sum(feat.reshape(B, TH * W, f_pad), axis=1)

    @pl.when(t == pl.num_programs(0) - 1)
    def _():
        # 1/HW is folded into wf, so the pooled SUM goes straight to the FC.
        pooled = pool_acc[...].astype(jnp.bfloat16)         # [B, F_PAD]
        logits = jnp.dot(pooled, wf_ref[...],
                         preferred_element_type=jnp.float32)
        out_ref[...] = logits + bf_ref[...]


def classifier_forward(x, params, *, row_tile=8):
    """Pallas-backed forward.  x: [B, C, H, W] float32 (NCHW, like PyTorch).
    Returns ([logits, 0], 0) mirroring Classifier.forward."""
    w_conv, b_conv, w_fc, b_fc = params                     # PyTorch layouts
    B, C, H, W = x.shape
    F, _, KH, KW = w_conv.shape
    NCLS = w_fc.shape[0]
    HW = H * W
    TH = row_tile if H % row_tile == 0 else H
    n_tiles = H // TH

    # --- input prep: NCHW -> zero-padded NHWC bf16, row-tiles with halo -----
    x_nhwc = jnp.transpose(x, (0, 2, 3, 1))                 # [B, H, W, C]
    xp = jnp.pad(x_nhwc, ((0, 0), (1, 1), (1, 1), (0, 0)))  # [B, H+2, W+2, C]
    tiles = [xp[:, i * TH: i * TH + TH + 2, :, :] for i in range(n_tiles)]
    xt = jnp.stack(tiles, axis=0).reshape(n_tiles * B, TH + 2, W + 2, C)
    xt = xt.astype(jnp.bfloat16)

    # --- weight prep (bf16 MXU operands, lane padding, pool scale folded) ---
    # conv weight [F, C, kh, kw] -> per-tap [kh*kw, C, F_PAD], (kh, kw) order.
    w_taps = jnp.transpose(w_conv, (2, 3, 1, 0)).reshape(KH * KW, C, F)
    w_taps = jnp.pad(w_taps, ((0, 0), (0, 0), (0, F_PAD - F))
                     ).astype(jnp.bfloat16)
    bc = jnp.pad(b_conv, (0, F_PAD - F)).reshape(1, F_PAD).astype(jnp.float32)
    # fc weight [NCLS, F] -> [F_PAD, NCLS_PAD], with 1/HW folded in (f32 math).
    wf = jnp.pad(w_fc.T / HW, ((0, F_PAD - F), (0, NCLS_PAD - NCLS))
                 ).astype(jnp.bfloat16)
    bf = jnp.pad(b_fc, (0, NCLS_PAD - NCLS)).reshape(1, NCLS_PAD
                                                     ).astype(jnp.float32)

    cost = pl.CostEstimate(
        flops=2 * B * HW * (C * KH * KW) * F_PAD + 2 * B * F_PAD * NCLS_PAD,
        transcendentals=0,
        bytes_accessed=(xt.size * 2 + w_taps.size * 2 + bc.size * 4
                        + wf.size * 2 + bf.size * 4 + B * NCLS_PAD * 4),
    )

    # TODO(synk): at larger batch add a leading "parallel" grid axis so v7x's
    #             two TensorCores both get work; with B=2 only the reduction
    #             ("arbitrary") axis over row-tiles is used.
    logits_pad = pl.pallas_call(
        _classifier_kernel,
        out_shape=jax.ShapeDtypeStruct((B, NCLS_PAD), jnp.float32),
        grid_spec=pltpu.PrefetchScalarGridSpec(
            num_scalar_prefetch=0,
            grid=(n_tiles,),
            in_specs=[
                pl.BlockSpec((B, TH + 2, W + 2, C), lambda i: (i, 0, 0, 0)),
                pl.BlockSpec((KH * KW, C, F_PAD), lambda i: (0, 0, 0)),
                pl.BlockSpec((1, F_PAD), lambda i: (0, 0)),
                pl.BlockSpec((F_PAD, NCLS_PAD), lambda i: (0, 0)),
                pl.BlockSpec((1, NCLS_PAD), lambda i: (0, 0)),
            ],
            out_specs=pl.BlockSpec((B, NCLS_PAD), lambda i: (0, 0)),
            scratch_shapes=[pltpu.VMEM((B, F_PAD), jnp.float32)],
        ),
        compiler_params=pltpu.CompilerParams(
            dimension_semantics=("arbitrary",)),
        cost_estimate=cost,
    )(xt, w_taps, bc, wf, bf)

    logits = logits_pad[:, :NCLS]
    # Reproduce the ([y, 0], 0) output structure of Classifier.forward.
    return ([logits, 0], 0)


def init_params(key, C, F, k, num_classes):
    """Deterministic parameter init, PyTorch layouts."""
    k1, k2, k3, k4 = jax.random.split(key, 4)
    w_conv = jax.random.normal(k1, (F, C, k, k), jnp.float32) * 0.1
    b_conv = jax.random.normal(k2, (F,), jnp.float32) * 0.01
    w_fc = jax.random.normal(k3, (num_classes, F), jnp.float32) * 0.1
    b_fc = jax.random.normal(k4, (num_classes,), jnp.float32) * 0.01
    return w_conv, b_conv, w_fc, b_fc


def reference_forward(x, w_conv, b_conv, w_fc, b_fc):
    """Pure-JAX f32 reference of the backbone head (for validation)."""
    y = jax.lax.conv_general_dilated(
        x, w_conv, window_strides=(1, 1), padding=((1, 1), (1, 1)),
        dimension_numbers=('NCHW', 'OIHW', 'NCHW'))
    y = jnp.maximum(y + b_conv[None, :, None, None], 0.0)
    pooled = jnp.mean(y, axis=(2, 3))
    return pooled @ w_fc.T + b_fc


if __name__ == "__main__":
    key = jax.random.PRNGKey(0)
    kx, kp = jax.random.split(key)

    # batch=2, channels=4, spatial=16x16, conv filters=16, num_classes=3.
    B, C, H, W = 2, 4, 16, 16
    F, K, NUM_CLASSES = 16, 3, 3

    x = jax.random.normal(kx, (B, C, H, W), jnp.float32)
    params = init_params(kp, C, F, K, NUM_CLASSES)

    out_struct, outer_zero = classifier_forward(x, params)
    logits, inner_zero = out_struct
    jax.block_until_ready(logits)

    assert logits.shape == (B, NUM_CLASSES), logits.shape
    assert inner_zero == 0
    assert outer_zero == 0
    assert bool(jnp.all(jnp.isfinite(logits)))

    ref = reference_forward(x, *params)
    assert bool(jnp.allclose(logits, ref, atol=5e-2, rtol=5e-2)), (
        float(jnp.max(jnp.abs(logits - ref))))

    print("KERNEL_OK")
</pallas_src>

<mosaic_0001>
module attributes {stable_mosaic.version = 11 : i64} {
  func.func @_classifier_kernel(%arg0: i32, %arg1: memref<2x10x18x4xbf16, #tpu.memory_space<vmem>>, %arg2: memref<9x4x128xbf16, #tpu.memory_space<vmem>>, %arg3: memref<1x128xf32, #tpu.memory_space<vmem>>, %arg4: memref<128x128xbf16, #tpu.memory_space<vmem>>, %arg5: memref<1x128xf32, #tpu.memory_space<vmem>>, %arg6: memref<2x128xf32, #tpu.memory_space<vmem>>, %arg7: memref<2x128xf32, #tpu.memory_space<vmem>>) attributes {dimension_semantics = [#tpu.dimension_semantics<arbitrary>], iteration_bounds = array<i64: 2>, scalar_prefetch = 0 : i64, scratch_operands = 1 : i64, tpu.core_type = #tpu.core_type<tc>, window_params = [{transform_indices = @transform_0, window_bounds = array<i64: 2, 10, 18, 4>}, {pipeline_mode = #tpu.pipeline_mode<synchronous>, transform_indices = @transform_1, window_bounds = array<i64: 9, 4, 128>}, {pipeline_mode = #tpu.pipeline_mode<synchronous>, transform_indices = @transform_2, window_bounds = array<i64: 1, 128>}, {pipeline_mode = #tpu.pipeline_mode<synchronous>, transform_indices = @transform_3, window_bounds = array<i64: 128, 128>}, {pipeline_mode = #tpu.pipeline_mode<synchronous>, transform_indices = @transform_4, window_bounds = array<i64: 1, 128>}, {pipeline_mode = #tpu.pipeline_mode<synchronous>, transform_indices = @transform_5, window_bounds = array<i64: 2, 128>}]} {
    %c0_i32 = arith.constant 0 : i32
    %0 = arith.cmpi eq, %arg0, %c0_i32 : i32
    %1 = arith.extui %0 : i1 to i32
    %c0_i32_0 = arith.constant 0 : i32
    %2 = arith.cmpi ne, %1, %c0_i32_0 : i32
    scf.if %2 {
      %cst_41 = arith.constant 0.000000e+00 : f32
      %72 = vector.broadcast %cst_41 : f32 to vector<2x128xf32>
      %c0_42 = arith.constant 0 : index
      %c0_43 = arith.constant 0 : index
      %73 = vector.load %arg7[%c0_42, %c0_43] : memref<2x128xf32, #tpu.memory_space<vmem>>, vector<2x128xf32>
      tpu.vector_store %arg7[%c0_42, %c0_43], %72 {strides = array<i32>} : memref<2x128xf32, #tpu.memory_space<vmem>>, vector<2x128xf32>,
    } else {
    }
    %c0 = arith.constant 0 : index
    %c0_1 = arith.constant 0 : index
    %c0_2 = arith.constant 0 : index
    %c0_3 = arith.constant 0 : index
    %3 = vector.load %arg1[%c0, %c0_1, %c0_2, %c0_3] : memref<2x10x18x4xbf16, #tpu.memory_space<vmem>>, vector<2x10x18x4xbf16>
    %cst = arith.constant 0.000000e+00 : f32
    %4 = vector.broadcast %cst : f32 to vector<256x128xf32>
    %5 = vector.extract_strided_slice %3 {offsets = [0, 0, 0, 0], sizes = [2, 8, 16, 4], strides = [1, 1, 1, 1]} : vector<2x10x18x4xbf16> to vector<2x8x16x4xbf16>
    %6 = vector.shape_cast %5 : vector<2x8x16x4xbf16> to vector<256x4xbf16>
    %c0_4 = arith.constant 0 : index
    %c0_5 = arith.constant 0 : index
    %c0_6 = arith.constant 0 : index
    %7 = vector.load %arg2[%c0_4, %c0_5, %c0_6] : memref<9x4x128xbf16, #tpu.memory_space<vmem>>, vector<1x4x128xbf16>
    %8 = vector.shape_cast %7 : vector<1x4x128xbf16> to vector<4x128xbf16>
    %cst_7 = arith.constant dense<0.000000e+00> : vector<256x128xf32>
    %9 = tpu.matmul %6, %8, %cst_7 {dimension_numbers = #tpu.dot_dimension_numbers<[1], [0], [0], [1], [0, 0, 1, 1], [], []>} : vector<256x4xbf16>, vector<4x128xbf16>, vector<256x128xf32> -> vector<256x128xf32>
    %10 = arith.addf %4, %9 : vector<256x128xf32>
    %11 = vector.extract_strided_slice %3 {offsets = [0, 0, 1, 0], sizes = [2, 8, 16, 4], strides = [1, 1, 1, 1]} : vector<2x10x18x4xbf16> to vector<2x8x16x4xbf16>
    %12 = vector.shape_cast %11 : vector<2x8x16x4xbf16> to vector<256x4xbf16>
    %c1 = arith.constant 1 : index
    %c0_8 = arith.constant 0 : index
    %c0_9 = arith.constant 0 : index
    %13 = vector.load %arg2[%c1, %c0_8, %c0_9] : memref<9x4x128xbf16, #tpu.memory_space<vmem>>, vector<1x4x128xbf16>
    %14 = vector.shape_cast %13 : vector<1x4x128xbf16> to vector<4x128xbf16>
    %cst_10 = arith.constant dense<0.000000e+00> : vector<256x128xf32>
    %15 = tpu.matmul %12, %14, %cst_10 {dimension_numbers = #tpu.dot_dimension_numbers<[1], [0], [0], [1], [0, 0, 1, 1], [], []>} : vector<256x4xbf16>, vector<4x128xbf16>, vector<256x128xf32> -> vector<256x128xf32>
    %16 = arith.addf %10, %15 : vector<256x128xf32>
    %17 = vector.extract_strided_slice %3 {offsets = [0, 0, 2, 0], sizes = [2, 8, 16, 4], strides = [1, 1, 1, 1]} : vector<2x10x18x4xbf16> to vector<2x8x16x4xbf16>
    %18 = vector.shape_cast %17 : vector<2x8x16x4xbf16> to vector<256x4xbf16>
    %c2 = arith.constant 2 : index
    %c0_11 = arith.constant 0 : index
    %c0_12 = arith.constant 0 : index
    %19 = vector.load %arg2[%c2, %c0_11, %c0_12] : memref<9x4x128xbf16, #tpu.memory_space<vmem>>, vector<1x4x128xbf16>
    %20 = vector.shape_cast %19 : vector<1x4x128xbf16> to vector<4x128xbf16>
    %cst_13 = arith.constant dense<0.000000e+00> : vector<256x128xf32>
    %21 = tpu.matmul %18, %20, %cst_13 {dimension_numbers = #tpu.dot_dimension_numbers<[1], [0], [0], [1], [0, 0, 1, 1], [], []>} : vector<256x4xbf16>, vector<4x128xbf16>, vector<256x128xf32> -> vector<256x128xf32>
    %22 = arith.addf %16, %21 : vector<256x128xf32>
    %23 = vector.extract_strided_slice %3 {offsets = [0, 1, 0, 0], sizes = [2, 8, 16, 4], strides = [1, 1, 1, 1]} : vector<2x10x18x4xbf16> to vector<2x8x16x4xbf16>
    %24 = vector.shape_cast %23 : vector<2x8x16x4xbf16> to vector<256x4xbf16>
    %c3 = arith.constant 3 : index
    %c0_14 = arith.constant 0 : index
    %c0_15 = arith.constant 0 : index
    %25 = vector.load %arg2[%c3, %c0_14, %c0_15] : memref<9x4x128xbf16, #tpu.memory_space<vmem>>, vector<1x4x128xbf16>
    %26 = vector.shape_cast %25 : vector<1x4x128xbf16> to vector<4x128xbf16>
    %cst_16 = arith.constant dense<0.000000e+00> : vector<256x128xf32>
    %27 = tpu.matmul %24, %26, %cst_16 {dimension_numbers = #tpu.dot_dimension_numbers<[1], [0], [0], [1], [0, 0, 1, 1], [], []>} : vector<256x4xbf16>, vector<4x128xbf16>, vector<256x128xf32> -> vector<256x128xf32>
    %28 = arith.addf %22, %27 : vector<256x128xf32>
    %29 = vector.extract_strided_slice %3 {offsets = [0, 1, 1, 0], sizes = [2, 8, 16, 4], strides = [1, 1, 1, 1]} : vector<2x10x18x4xbf16> to vector<2x8x16x4xbf16>
    %30 = vector.shape_cast %29 : vector<2x8x16x4xbf16> to vector<256x4xbf16>
    %c4 = arith.constant 4 : index
    %c0_17 = arith.constant 0 : index
    %c0_18 = arith.constant 0 : index
    %31 = vector.load %arg2[%c4, %c0_17, %c0_18] : memref<9x4x128xbf16, #tpu.memory_space<vmem>>, vector<1x4x128xbf16>
    %32 = vector.shape_cast %31 : vector<1x4x128xbf16> to vector<4x128xbf16>
    %cst_19 = arith.constant dense<0.000000e+00> : vector<256x128xf32>
    %33 = tpu.matmul %30, %32, %cst_19 {dimension_numbers = #tpu.dot_dimension_numbers<[1], [0], [0], [1], [0, 0, 1, 1], [], []>} : vector<256x4xbf16>, vector<4x128xbf16>, vector<256x128xf32> -> vector<256x128xf32>
    %34 = arith.addf %28, %33 : vector<256x128xf32>
    %35 = vector.extract_strided_slice %3 {offsets = [0, 1, 2, 0], sizes = [2, 8, 16, 4], strides = [1, 1, 1, 1]} : vector<2x10x18x4xbf16> to vector<2x8x16x4xbf16>
    %36 = vector.shape_cast %35 : vector<2x8x16x4xbf16> to vector<256x4xbf16>
    %c5 = arith.constant 5 : index
    %c0_20 = arith.constant 0 : index
    %c0_21 = arith.constant 0 : index
    %37 = vector.load %arg2[%c5, %c0_20, %c0_21] : memref<9x4x128xbf16, #tpu.memory_space<vmem>>, vector<1x4x128xbf16>
    %38 = vector.shape_cast %37 : vector<1x4x128xbf16> to vector<4x128xbf16>
    %cst_22 = arith.constant dense<0.000000e+00> : vector<256x128xf32>
    %39 = tpu.matmul %36, %38, %cst_22 {dimension_numbers = #tpu.dot_dimension_numbers<[1], [0], [0], [1], [0, 0, 1, 1], [], []>} : vector<256x4xbf16>, vector<4x128xbf16>, vector<256x128xf32> -> vector<256x128xf32>
    %40 = arith.addf %34, %39 : vector<256x128xf32>
    %41 = vector.extract_strided_slice %3 {offsets = [0, 2, 0, 0], sizes = [2, 8, 16, 4], strides = [1, 1, 1, 1]} : vector<2x10x18x4xbf16> to vector<2x8x16x4xbf16>
    %42 = vector.shape_cast %41 : vector<2x8x16x4xbf16> to vector<256x4xbf16>
    %c6 = arith.constant 6 : index
    %c0_23 = arith.constant 0 : index
    %c0_24 = arith.constant 0 : index
    %43 = vector.load %arg2[%c6, %c0_23, %c0_24] : memref<9x4x128xbf16, #tpu.memory_space<vmem>>, vector<1x4x128xbf16>
    %44 = vector.shape_cast %43 : vector<1x4x128xbf16> to vector<4x128xbf16>
    %cst_25 = arith.constant dense<0.000000e+00> : vector<256x128xf32>
    %45 = tpu.matmul %42, %44, %cst_25 {dimension_numbers = #tpu.dot_dimension_numbers<[1], [0], [0], [1], [0, 0, 1, 1], [], []>} : vector<256x4xbf16>, vector<4x128xbf16>, vector<256x128xf32> -> vector<256x128xf32>
    %46 = arith.addf %40, %45 : vector<256x128xf32>
    %47 = vector.extract_strided_slice %3 {offsets = [0, 2, 1, 0], sizes = [2, 8, 16, 4], strides = [1, 1, 1, 1]} : vector<2x10x18x4xbf16> to vector<2x8x16x4xbf16>
    %48 = vector.shape_cast %47 : vector<2x8x16x4xbf16> to vector<256x4xbf16>
    %c7 = arith.constant 7 : index
    %c0_26 = arith.constant 0 : index
    %c0_27 = arith.constant 0 : index
    %49 = vector.load %arg2[%c7, %c0_26, %c0_27] : memref<9x4x128xbf16, #tpu.memory_space<vmem>>, vector<1x4x128xbf16>
    %50 = vector.shape_cast %49 : vector<1x4x128xbf16> to vector<4x128xbf16>
    %cst_28 = arith.constant dense<0.000000e+00> : vector<256x128xf32>
    %51 = tpu.matmul %48, %50, %cst_28 {dimension_numbers = #tpu.dot_dimension_numbers<[1], [0], [0], [1], [0, 0, 1, 1], [], []>} : vector<256x4xbf16>, vector<4x128xbf16>, vector<256x128xf32> -> vector<256x128xf32>
    %52 = arith.addf %46, %51 : vector<256x128xf32>
    %53 = vector.extract_strided_slice %3 {offsets = [0, 2, 2, 0], sizes = [2, 8, 16, 4], strides = [1, 1, 1, 1]} : vector<2x10x18x4xbf16> to vector<2x8x16x4xbf16>
    %54 = vector.shape_cast %53 : vector<2x8x16x4xbf16> to vector<256x4xbf16>
    %c8 = arith.constant 8 : index
    %c0_29 = arith.constant 0 : index
    %c0_30 = arith.constant 0 : index
    %55 = vector.load %arg2[%c8, %c0_29, %c0_30] : memref<9x4x128xbf16, #tpu.memory_space<vmem>>, vector<1x4x128xbf16>
    %56 = vector.shape_cast %55 : vector<1x4x128xbf16> to vector<4x128xbf16>
    %cst_31 = arith.constant dense<0.000000e+00> : vector<256x128xf32>
    %57 = tpu.matmul %54, %56, %cst_31 {dimension_numbers = #tpu.dot_dimension_numbers<[1], [0], [0], [1], [0, 0, 1, 1], [], []>} : vector<256x4xbf16>, vector<4x128xbf16>, vector<256x128xf32> -> vector<256x128xf32>
    %58 = arith.addf %52, %57 : vector<256x128xf32>
    %c0_32 = arith.constant 0 : index
    %c0_33 = arith.constant 0 : index
    %59 = vector.load %arg3[%c0_32, %c0_33] : memref<1x128xf32, #tpu.memory_space<vmem>>, vector<1x128xf32>
    %60 = vector.broadcast %59 : vector<1x128xf32> to vector<256x128xf32>
    %61 = arith.addf %58, %60 : vector<256x128xf32>
    %cst_34 = arith.constant 0.000000e+00 : f32
    %62 = vector.broadcast %cst_34 : f32 to vector<256x128xf32>
    %63 = arith.maximumf %61, %62 : vector<256x128xf32>
    %c0_35 = arith.constant 0 : index
    %c0_36 = arith.constant 0 : index
    %64 = vector.load %arg7[%c0_35, %c0_36] : memref<2x128xf32, #tpu.memory_space<vmem>>, vector<2x128xf32>
    %65 = vector.shape_cast %63 : vector<256x128xf32> to vector<2x128x128xf32>
    %cst_37 = arith.constant dense<0.000000e+00> : vector<2x128xf32>
    %66 = vector.multi_reduction <add>, %65, %cst_37 [1] : vector<2x128x128xf32> to vector<2x128xf32>
    %67 = arith.addf %64, %66 : vector<2x128xf32>
    %c0_38 = arith.constant 0 : index
    %c0_39 = arith.constant 0 : index
    %68 = vector.load %arg7[%c0_38, %c0_39] : memref<2x128xf32, #tpu.memory_space<vmem>>, vector<2x128xf32>
    tpu.vector_store %arg7[%c0_38, %c0_39], %67 {strides = array<i32>} : memref<2x128xf32, #tpu.memory_space<vmem>>, vector<2x128xf32>,
    %c1_i32 = arith.constant 1 : i32
    %69 = arith.cmpi eq, %arg0, %c1_i32 : i32
    %70 = arith.extui %69 : i1 to i32
    %c0_i32_40 = arith.constant 0 : i32
    %71 = arith.cmpi ne, %70, %c0_i32_40 : i32
    scf.if %71 {
      %c0_41 = arith.constant 0 : index
      %c0_42 = arith.constant 0 : index
      %72 = vector.load %arg7[%c0_41, %c0_42] : memref<2x128xf32, #tpu.memory_space<vmem>>, vector<2x128xf32>
      %73 = arith.truncf %72 : vector<2x128xf32> to vector<2x128xbf16>
      %c0_43 = arith.constant 0 : index
      %c0_44 = arith.constant 0 : index
      %74 = vector.load %arg4[%c0_43, %c0_44] : memref<128x128xbf16, #tpu.memory_space<vmem>>, vector<128x128xbf16>
      %cst_45 = arith.constant dense<0.000000e+00> : vector<2x128xf32>
      %75 = tpu.matmul %73, %74, %cst_45 {dimension_numbers = #tpu.dot_dimension_numbers<[1], [0], [0], [1], [0, 0, 1, 1], [], []>} : vector<2x128xbf16>, vector<128x128xbf16>, vector<2x128xf32> -> vector<2x128xf32>
      %c0_46 = arith.constant 0 : index
      %c0_47 = arith.constant 0 : index
      %76 = vector.load %arg5[%c0_46, %c0_47] : memref<1x128xf32, #tpu.memory_space<vmem>>, vector<1x128xf32>
      %77 = vector.broadcast %76 : vector<1x128xf32> to vector<2x128xf32>
      %78 = arith.addf %75, %77 : vector<2x128xf32>
      %c0_48 = arith.constant 0 : index
      %c0_49 = arith.constant 0 : index
      %79 = vector.load %arg6[%c0_48, %c0_49] : memref<2x128xf32, #tpu.memory_space<vmem>>, vector<2x128xf32>
      tpu.vector_store %arg6[%c0_48, %c0_49], %78 {strides = array<i32>} : memref<2x128xf32, #tpu.memory_space<vmem>>, vector<2x128xf32>,
    } else {
    }
    return
  }
  func.func @transform_0(%arg0: i32) -> (i32, i32, i32, i32) {
    %c0_i32 = arith.constant 0 : i32
    %c0_i32_0 = arith.constant 0 : i32
    %c0_i32_1 = arith.constant 0 : i32
    %c0_i32_2 = arith.constant 0 : i32
    return %arg0, %c0_i32, %c0_i32_0, %c0_i32_1 : i32, i32, i32, i32
  }
  func.func @transform_1(%arg0: i32) -> (i32, i32, i32) {
    %c0_i32 = arith.constant 0 : i32
    %c0_i32_0 = arith.constant 0 : i32
    %c0_i32_1 = arith.constant 0 : i32
    %c0_i32_2 = arith.constant 0 : i32
    return %c0_i32, %c0_i32_0, %c0_i32_1 : i32, i32, i32
  }
  func.func @transform_2(%arg0: i32) -> (i32, i32) {
    %c0_i32 = arith.constant 0 : i32
    %c0_i32_0 = arith.constant 0 : i32
    %c0_i32_1 = arith.constant 0 : i32
    return %c0_i32, %c0_i32_0 : i32, i32
  }
  func.func @transform_3(%arg0: i32) -> (i32, i32) {
    %c0_i32 = arith.constant 0 : i32
    %c0_i32_0 = arith.constant 0 : i32
    %c0_i32_1 = arith.constant 0 : i32
    return %c0_i32, %c0_i32_0 : i32, i32
  }
  func.func @transform_4(%arg0: i32) -> (i32, i32) {
    %c0_i32 = arith.constant 0 : i32
    %c0_i32_0 = arith.constant 0 : i32
    %c0_i32_1 = arith.constant 0 : i32
    return %c0_i32, %c0_i32_0 : i32, i32
  }
  func.func @transform_5(%arg0: i32) -> (i32, i32) {
    %c0_i32 = arith.constant 0 : i32
    %c0_i32_0 = arith.constant 0 : i32
    %c0_i32_1 = arith.constant 0 : i32
    return %c0_i32, %c0_i32_0 : i32, i32
  }
}

</mosaic_0001>

<bundles_post_ra>
// kernel: tpu_custom_call.1
= control target key start
LH: loop header
LB: loop body
LE: loop exit
PB: predicated region body
PF: predicated region fallthrough
CT: control target
= control target key end

     0   :  { %10 = vsyncpa [#allocation4], 0  ;;  %s4465_s18 = smov 0   ;;  %s5577_s0 = inlined_call_operand.vmem [shape: bf16[4,10,18,4], index: 0, kind: input, shape index: {}]   ;;  %s5578_s1 = inlined_call_operand.vmem [shape: bf16[9,4,128], index: 1, kind: input, shape index: {}]   ;;  %s5579_s2 = inlined_call_operand.vmem [shape: f32[1,128], index: 2, kind: input, shape index: {}]   ;;  %s5580_s3 = inlined_call_operand.vmem [shape: bf16[128,128], index: 3, kind: input, shape index: {}]   ;;  %s5581_s4 = inlined_call_operand.vmem [shape: f32[1,128], index: 4, kind: input, shape index: {}]   ;;  %s5582_s5 = inlined_call_operand.hbm [shape: f32[2,128], index: 5, kind: output, shape index: {}]  }
   0x1 LB: > { %s4471_s19 = sadd.s32 4294967295, %s4429_s18   ;;  %p3335_p0 = scmp.ge.s32.totalorder %s4429_s18, 1  ;;  %s4429_s18 = sphi %s4465_s18, %s16_s18  }
   0x2   : > { %p185_p1 = scmp.lt.s32.totalorder %s4429_s18, 3 }
   0x4   : > { %p186_p2 = pnand %p3335_p0, %p185_p1 }
   0x6   : > { %189 = sbr.rel (%p186_p2) target bundleno = 833 (0x341), region = 40 }
   0xd   : > { %s3336_s20 = sshll.u32 %s4471_s19, 1  ;;  %p3338_p4 = scmp.ne.s32.totalorder %s4471_s19, 0 }
   0xe   : > { %p210_p3 = scmp.lt.s32.totalorder %s3336_s20, 3  ;;  %v4431_v0 = vmov (!%p3338_p4), 0.0  }
   0xf   : > { %220 = sbr.rel (%p3338_p4) target bundleno = 22 (0x16), region = 44  ;;  %221 = vst [vmem:[#allocation2] sm:$0x3] (!%p3338_p4), %v4431_v0 }
  0x10   : > { %s5677_s20 = smov (!%p210_p3, %s3336_s20), 3 }
  0x11   : > { %s4342_s21 = smul.u32 120, %s5677_s20 }
  0x13   : > { %s4479_s24 = scalar_lea.vmem %s5577_s0, %s4342_s21 }
  0x16 PF: > { %v3339_v1 = vld [vmem:[%s5578_s1 + $0x2] sm:$0x3]  ;;  %vm769_vm0 = vcmask 1041408   ;;  %v3472_v2 = vld [vmem:[%s5578_s1 + $0x8] sm:$0x3]  ;;  %vm720_vm3 = vcmask 31744  }
  0x17   : > { %4332 = vmatprep.subr.msk.bf16.mxu1 %vm769_vm0, %v3339_v1  ;;  %4336 = vmatprep.subr.msk.bf16.mxu0 %vm769_vm0, %v3472_v2  ;;  %v771_v3 = vsel %vm769_vm0, %v3339_v1, 0  ;;  %v4492_v4 = vsel %vm769_vm0, %v3472_v2, 0  ;;  %v4495_v5 = vld [vmem:[%s4479_s24] sm:$0xf]  ;;  %v4498_v6 = vld [vmem:[%s4479_s24 + $0x4] sm:$0xf] }
  0x18   : > { %5619 = vst [vmem:[#allocation6_spill] sm:$0xff] %v4492_v4  ;;  %3749 = vmatpush3.bf16.msra.mxu1 %v771_v3  ;;  %3885 = vmatpush3.bf16.msra.mxu0 %v4492_v4  ;;  %v224_v7 = vld [vmem:[%s4479_s24 + $0x8] sm:$0x1]  ;;  %vm283_vm1 = vsmask.f32 3328  ;;  %v287_v8 = vshrl.u32 %v4495_v5, 16 }
  0x19   : > { %vm284_vm2 = vsmask.f32 7440  ;;  %v290_v9 = vshll.u32 %v4495_v5, 16  ;;  %v296_v10 = vshll.u32 %v4498_v6, 16  ;;  %v300_v11 = vshrl.u32 %v4498_v6, 16  ;;  %p3572_p5 = scmp.ne.s32.totalorder %s4471_s19, 1 }
  0x1a   : > { %v282_v12 = vld [vmem:[%s5578_s1] sm:$0x3]  ;;  %v306_v13 = vshll.u32 %v224_v7, 16  ;;  %v4511_v14 = vld [vmem:[%s4479_s24 + $0xc] sm:$0xf]  ;;  %v289_v16 = vrot.slane %v287_v8, 4  ;;  %vm4533_vm4 = vmor %vm283_vm1, %vm284_vm2 }
  0x1b   : > { %4333 = vmatprep.subr.msk.bf16.mxu1 %vm769_vm0, %v282_v12  ;;  %v4514_v15 = vld [vmem:[%s4479_s24 + $0x10] sm:$0xf]  ;;  %v292_v17 = vrot.slane %v290_v9, 5  ;;  %v298_v18 = vrot.slane %v296_v10, 5  ;;  %v302_v19 = vrot.slane %v300_v11, 4  ;;  %v311_v22 = vshrl.u32 %v4511_v14, 16 }
  0x1c   : > { %v4517_v20 = vld [vmem:[%s4479_s24 + $0x14] sm:$0x1]  ;;  %v308_v21 = vrot.slane %v306_v13, 5  ;;  %v314_v23 = vshll.u32 %v4511_v14, 16  ;;  %v320_v24 = vshll.u32 %v4514_v15, 16  ;;  %v324_v28 = vshrl.u32 %v4514_v15, 16 }
  0x1d   : > { %v3493_v25 = vld [vmem:[%s5578_s1 + $0xa] sm:$0x3]  ;;  %v293_v26 = vor.u32 %v292_v17, %v289_v16  ;;  %v303_v27 = vor.u32 %v302_v19, %v298_v18  ;;  %v330_v29 = vshll.u32 %v4517_v20, 16  ;;  %v4529_v30 = vld [vmem:[%s4479_s24 + $0x18] sm:$0xf]  ;;  %v313_v32 = vrot.slane %v311_v22, 4 }
  0x1e   : > { %4338 = vmatprep.subr.msk.bf16.mxu0 %vm769_vm0, %v3493_v25  ;;  %v316_v33 = vrot.slane %v314_v23, 5  ;;  %v322_v34 = vrot.slane %v320_v24, 5  ;;  %v4539_v35 = vcombine.low %v4511_v14, %v4514_v15  ;;  %v326_v38 = vrot.slane %v324_v28, 4  ;;  %v4542_v40 = vld [vmem:[%s4479_s24 + $0x1c] sm:$0xf] }
  0x1f   : > { %v294_v36 = vrot.slane %v293_v26, 4  ;;  %v304_v37 = vrot.slane %v303_v27, 4  ;;  %v332_v39 = vrot.slane %v330_v29, 5  ;;  %v1257_v42 = vrot.slane %v4517_v20, 5  ;;  %v4547_v44 = vld [vmem:[%s4479_s24 + $0x20] sm:$0x1] }
  0x20   : > { %v317_v41 = vor.u32 %v316_v33, %v313_v32  ;;  %v1063_v43 = vsel %vm769_vm0, %v282_v12, 0  ;;  %v335_v45 = vshrl.u32 %v4529_v30, 16  ;;  %v327_v48 = vor.u32 %v326_v38, %v322_v34  ;;  %v4559_v58 = vld [vmem:[%s4479_s24 + $0x24] sm:$0xf]  ;;  %v4567_v63 = vld [vmem:[%s4479_s24 + $0x28] sm:$0xf] }
  0x21   : > { %v299_v46 = vsel %vm4533_vm4, %v294_v36, %v298_v18  ;;  %v309_v47 = vsel %vm4533_vm4, %v304_v37, %v308_v21  ;;  %v338_v49 = vshll.u32 %v4529_v30, 16  ;;  %v344_v53 = vshll.u32 %v4542_v40, 16  ;;  %v4572_v7 = vld [vmem:[%s4479_s24 + $0x2c] sm:$0x1]  ;;  %v4575_v8 = vld [vmem:[%s4479_s24 + $0x30] sm:$0xf] }
  0x22   : > { %v3340_v50 = vcombine.low %v299_v46, %v309_v47  ;;  %v318_v51 = vrot.slane %v317_v41, 4  ;;  %v337_v52 = vrot.slane %v335_v45, 4  ;;  %v328_v54 = vrot.slane %v327_v48, 4  ;;  %v4586_v23 = vld [vmem:[%s4479_s24 + $0x34] sm:$0xf] }
  0x23   : > { %v340_v55 = vrot.slane %v338_v49, 5  ;;  %v348_v56 = vshrl.u32 %v4542_v40, 16  ;;  %v354_v57 = vshll.u32 %v4547_v44, 16  ;;  %v346_v60 = vrot.slane %v344_v53, 5  ;;  %v4592_v29 = vld [vmem:[%s4479_s24 + $0x38] sm:$0x1] }
  0x24   : > { %3750 = vmatprep.mubr.msk.bf16.mxu1 %vm720_vm3, %v3340_v50  ;;  %v323_v59 = vsel %vm4533_vm4, %v318_v51, %v322_v34  ;;  %v333_v0 = vsel %vm4533_vm4, %v328_v54, %v332_v39  ;;  %v2154_v10 = vsel %vm769_vm0, %v3493_v25, 0  ;;  %v359_v11 = vshrl.u32 %v4559_v58, 16  ;;  %v4596_v37 = vld [vmem:[%s4479_s24 + $0x3c] sm:$0xf]  ;;  %v4606_v49 = vld [vmem:[%s4479_s24 + $0x40] sm:$0xf] }
  0x25   : > { %v341_v1 = vor.u32 %v340_v55, %v337_v52  ;;  %v350_v2 = vrot.slane %v348_v56, 4  ;;  %v356_v3 = vrot.slane %v354_v57, 5  ;;  %v3341_v9 = vcombine.low %v323_v59, %v333_v0  ;;  %v4616_v57 = vld [vmem:[%s4479_s24 + $0x44] sm:$0x1]  ;;  %v4774_v62 = vld [vmem:[%s4479_s24 + $0x90] sm:$0xf] }
  0x26   : > { %v362_v12 = vshll.u32 %v4559_v58, 16  ;;  %v368_v17 = vshll.u32 %v4567_v63, 16  ;;  %v372_v18 = vshrl.u32 %v4567_v63, 16  ;;  %v361_v19 = vrot.slane %v359_v11, 4 }
  0x27   : > { %v342_v13 = vrot.slane %v341_v1, 4  ;;  %v351_v16 = vor.u32 %v350_v2, %v346_v60  ;;  %3886 = vmatprep.mubr.msk.bf16.mxu0 %vm720_vm3, %v3341_v9  ;;  %3751 = vmatmul.mubr.msk.bf16.vlgmr.msra.gmra.mrb[0].mxu1 %vm720_vm3, %v3341_v9  ;;  %v378_v22 = vshll.u32 %v4572_v7, 16  ;;  %v383_v24 = vshrl.u32 %v4575_v8, 16  ;;  %v4628_v9 = vld [vmem:[%s5578_s1 + $0xc] sm:$0x3] }
  0x28   : > { %v364_v21 = vrot.slane %v362_v12, 5  ;;  %3783 = vmatpush3.bf16.msra.mxu1 %v1063_v43  ;;  %v370_v27 = vrot.slane %v368_v17, 5  ;;  %v374_v28 = vrot.slane %v372_v18, 4  ;;  %v386_v36 = vshll.u32 %v4575_v8, 16 }
  0x29   : > { %v347_v25 = vsel %vm4533_vm4, %v342_v13, %v346_v60  ;;  %v352_v26 = vrot.slane %v351_v16, 4  ;;  %v380_v33 = vrot.slane %v378_v22, 5  ;;  %v385_v34 = vrot.slane %v383_v24, 4  ;;  %v4620_v60 = vld [vmem:[%s4479_s24 + $0x48] sm:$0xf] }
  0x2a   : > { %v365_v32 = vor.u32 %v364_v21, %v361_v19  ;;  %v375_v39 = vor.u32 %v374_v28, %v370_v27  ;;  %v392_v41 = vshll.u32 %v4586_v23, 16  ;;  %v396_v43 = vshrl.u32 %v4586_v23, 16  ;;  %v4634_v16 = vld [vmem:[%s4479_s24 + $0x4c] sm:$0xf]  ;;  %v4651_v28 = vld [vmem:[%s4479_s24 + $0x54] sm:$0xf] }
  0x2b   : > { %v357_v38 = vsel %vm4533_vm4, %v352_v26, %v356_v3  ;;  %v388_v47 = vrot.slane %v386_v36, 5  ;;  %v402_v48 = vshll.u32 %v4592_v29, 16  ;;  %v407_v53 = vshrl.u32 %v4596_v37, 16  ;;  %v4647_v26 = vld [vmem:[%s4479_s24 + $0x50] sm:$0x1]  ;;  %5624 = vst [vmem:[#allocation9_spill] sm:$0xff] %v4651_v28 }
  0x2c   : > { %v4602_v45 = vcombine.low %v347_v25, %v357_v38  ;;  %v366_v46 = vrot.slane %v365_v32, 4  ;;  %v376_v50 = vrot.slane %v375_v39, 4  ;;  %v394_v51 = vrot.slane %v392_v41, 5 }
  0x2d   : > { %v398_v52 = vrot.slane %v396_v43, 4  ;;  %v389_v55 = vor.u32 %v388_v47, %v385_v34  ;;  %v404_v56 = vrot.slane %v402_v48, 5  ;;  %v410_v59 = vshll.u32 %v4596_v37, 16 }
  0x2e   : > { %5622 = vst [vmem:[#allocation7_spill] sm:$0xff] %v4602_v45  ;;  %3887 = vmatmul.mubr.msk.bf16.vlgmr.msra.gmra.mrb[0].mxu0 %vm720_vm3, %v4602_v45  ;;  %3754 = vmatprep.mubr.msk.bf16.mxu1 %vm720_vm3, %v4602_v45  ;;  %v371_v54 = vsel %vm4533_vm4, %v366_v46, %v370_v27  ;;  %v381_v0 = vsel %vm4533_vm4, %v376_v50, %v380_v33  ;;  %v409_v2 = vrot.slane %v407_v53, 4  ;;  %v416_v3 = vshll.u32 %v4606_v49, 16  ;;  %v4659_v46 = vld [vmem:[%s4479_s24 + $0x58] sm:$0xf] }
  0x2f   : > { %3919 = vmatpush3.bf16.msra.mxu0 %v2154_v10  ;;  %v399_v1 = vor.u32 %v398_v52, %v394_v51  ;;  %v4630_v11 = vcombine.low %v371_v54, %v381_v0  ;;  %v390_v12 = vrot.slane %v389_v55, 4  ;;  %v412_v13 = vrot.slane %v410_v59, 5  ;;  %5626 = vst [vmem:[#allocation11_spill] sm:$0xff] %v4659_v46  ;;  %v4671_v55 = vld [vmem:[%s4479_s24 + $0x5c] sm:$0x1] }
  0x30   : > { %v420_v10 = vshrl.u32 %v4606_v49, 16  ;;  %4339 = vmatprep.subr.msk.bf16.mxu0 %vm769_vm0, %v4628_v9  ;;  %v418_v18 = vrot.slane %v416_v3, 5  ;;  %v426_v19 = vshll.u32 %v4616_v57, 16  ;;  %v431_v21 = vshrl.u32 %v4620_v60, 16  ;;  %v4676_v3 = vld [vmem:[%s4479_s24 + $0x60] sm:$0xf] }
  0x31   : > { %5623 = vst [vmem:[#allocation8_spill] sm:$0xff] %v4630_v11  ;;  %v400_v17 = vrot.slane %v399_v1, 4  ;;  %3890 = vmatprep.mubr.msk.bf16.mxu0 %vm720_vm3, %v4630_v11  ;;  %3755 = vmatmul.mubr.msk.bf16.gmra.mrb[4].mxu1 %vm720_vm3, %v4630_v11  ;;  %v395_v22 = vsel %vm4533_vm4, %v390_v12, %v394_v51  ;;  %v413_v24 = vor.u32 %v412_v13, %v409_v2  ;;  %v434_v27 = vshll.u32 %v4620_v60, 16 }
  0x32   : > { %v422_v25 = vrot.slane %v420_v10, 4  ;;  %v428_v33 = vrot.slane %v426_v19, 5  ;;  %v433_v34 = vrot.slane %v431_v21, 4  ;;  %v440_v36 = vshll.u32 %v4634_v16, 16 }
  0x33   : > { %v405_v32 = vsel %vm4533_vm4, %v400_v17, %v404_v56  ;;  %v414_v39 = vrot.slane %v413_v24, 4  ;;  %v436_v43 = vrot.slane %v434_v27, 5  ;;  %v444_v48 = vshrl.u32 %v4634_v16, 16 }
  0x34   : > { %v4656_v38 = vcombine.low %v395_v22, %v405_v32  ;;  %v423_v41 = vor.u32 %v422_v25, %v418_v18  ;;  %v442_v47 = vrot.slane %v440_v36, 5  ;;  %v450_v50 = vshll.u32 %v4647_v26, 16 }
  0x35   : > { %v455_v51 = vshrl.u32 %v4651_v28, 16  ;;  %v419_v52 = vsel %vm4533_vm4, %v414_v39, %v418_v18  ;;  %v437_v54 = vor.u32 %v436_v43, %v433_v34  ;;  %v458_v56 = vshll.u32 %v4651_v28, 16  ;;  %v4682_v18 = vld [vmem:[%s4479_s24 + $0x64] sm:$0xf]  ;;  %v4690_v34 = vld [vmem:[%s4479_s24 + $0x68] sm:$0x1] }
  0x36   : > { %5625 = vst [vmem:[#allocation10_spill] sm:$0xff] %v4656_v38  ;;  %3891 = vmatmul.mubr.msk.bf16.gmra.mrb[4].mxu0 %vm720_vm3, %v4656_v38  ;;  %3758 = vmatprep.mubr.msk.bf16.mxu1 %vm720_vm3, %v4656_v38  ;;  %v424_v53 = vrot.slane %v423_v41, 4  ;;  %v446_v59 = vrot.slane %v444_v48, 4  ;;  %v452_v0 = vrot.slane %v450_v50, 5  ;;  %v464_v2 = vshll.u32 %v4659_v46, 16 }
  0x37   : > { %v457_v1 = vrot.slane %v455_v51, 4  ;;  %v438_v13 = vrot.slane %v437_v54, 4  ;;  %v460_v10 = vrot.slane %v458_v56, 5  ;;  %v468_v17 = vshrl.u32 %v4659_v46, 16 }
  0x38   : > { %v429_v12 = vsel %vm4533_vm4, %v424_v53, %v428_v33  ;;  %v447_v21 = vor.u32 %v446_v59, %v442_v47  ;;  %v466_v22 = vrot.slane %v464_v2, 5  ;;  %v474_v24 = vshll.u32 %v4671_v55, 16 }
  0x39   : > { %v4684_v19 = vcombine.low %v419_v52, %v429_v12  ;;  %v443_v25 = vsel %vm4533_vm4, %v438_v13, %v442_v47  ;;  %v461_v27 = vor.u32 %v460_v10, %v457_v1  ;;  %v470_v32 = vrot.slane %v468_v17, 4  ;;  %v4701_v52 = vld [vmem:[%s4479_s24 + $0x78] sm:$0xf]  ;;  %v4707_v1 = vld [vmem:[%s4479_s24 + $0x7c] sm:$0xf] }
  0x3a   : > { %v1866_v33 = vshrl.u32 %v4676_v3, 16  ;;  %v448_v36 = vrot.slane %v447_v21, 4  ;;  %v476_v39 = vrot.slane %v474_v24, 5  ;;  %v1869_v41 = vshll.u32 %v4676_v3, 16  ;;  %5628 = vst [vmem:[#allocation13_spill] sm:$0xff] %v4701_v52  ;;  %5629 = vst [vmem:[#allocation14_spill] sm:$0xff] %v4707_v1 }
  0x3b   : > { %5627 = vst [vmem:[#allocation12_spill] sm:$0xff] %v4684_v19  ;;  %3894 = vmatprep.mubr.msk.bf16.mxu0 %vm720_vm3, %v4684_v19  ;;  %3759 = vmatmul.mubr.msk.bf16.gmra.mrb[8].mxu1 %vm720_vm3, %v4684_v19  ;;  %v1875_v43 = vshll.u32 %v4682_v18, 16  ;;  %v462_v47 = vrot.slane %v461_v27, 4  ;;  %v471_v48 = vor.u32 %v470_v32, %v466_v22  ;;  %v1879_v51 = vshrl.u32 %v4682_v18, 16  ;;  %v4714_v17 = vld [vmem:[%s4479_s24 + $0x80] sm:$0x1] }
  0x3c   : > { %v1868_v50 = vrot.slane %v1866_v33, 4  ;;  %v453_v53 = vsel %vm4533_vm4, %v448_v36, %v452_v0  ;;  %v1871_v54 = vrot.slane %v1869_v41, 5  ;;  %v1885_v59 = vshll.u32 %v4690_v34, 16  ;;  %5631 = vst [vmem:[#allocation16_spill] sm:$0xff] %v4714_v17  ;;  %v4721_v32 = vld [vmem:[%s5578_s1 + $0x4] sm:$0x3] }
  0x3d   : > { %v1877_v56 = vrot.slane %v1875_v43, 5  ;;  %v4709_v2 = vcombine.low %v443_v25, %v453_v53  ;;  %v467_v12 = vsel %vm4533_vm4, %v462_v47, %v466_v22  ;;  %v472_v13 = vrot.slane %v471_v48, 4  ;;  %4334 = vmatprep.subr.msk.bf16.mxu1 %vm769_vm0, %v4721_v32 }
  0x3e   : > { %v1881_v10 = vrot.slane %v1879_v51, 4  ;;  %v1872_v21 = vor.u32 %v1871_v54, %v1868_v50  ;;  %v1887_v24 = vrot.slane %v1885_v59, 5  ;;  %v479_v27 = vshrl.u32 %v4701_v52, 16 }
  0x3f   : > { %5630 = vst [vmem:[#allocation15_spill] sm:$0xff] %v4709_v2  ;;  %v482_v0 = vshll.u32 %v4701_v52, 16  ;;  %3895 = vmatmul.mubr.msk.bf16.gmra.mrb[8].mxu0 %vm720_vm3, %v4709_v2  ;;  %3762 = vmatprep.mubr.msk.bf16.mxu1 %vm720_vm3, %v4709_v2  ;;  %v477_v22 = vsel %vm4533_vm4, %v472_v13, %v476_v39  ;;  %v488_v33 = vshll.u32 %v4707_v1, 16  ;;  %v492_v36 = vshrl.u32 %v4707_v1, 16  ;;  %v4737_v39 = vld [vmem:[%s4479_s24 + $0x84] sm:$0xf] }
  0x40   : > { %v1882_v25 = vor.u32 %v1881_v10, %v1877_v56  ;;  %v4731_v41 = vcombine.low %v467_v12, %v477_v22  ;;  %v1873_v43 = vrot.slane %v1872_v21, 4  ;;  %v481_v47 = vrot.slane %v479_v27, 4  ;;  %v4746_v13 = vld [vmem:[%s4479_s24 + $0x88] sm:$0xf] }
  0x41   : > { %v484_v48 = vrot.slane %v482_v0, 5  ;;  %v490_v51 = vrot.slane %v488_v33, 5  ;;  %v494_v53 = vrot.slane %v492_v36, 4  ;;  %v498_v54 = vshll.u32 %v4714_v17, 16 }
  0x42   : > { %5632 = vst [vmem:[#allocation17_spill] sm:$0xff] %v4731_v41  ;;  %v1883_v50 = vrot.slane %v1882_v25, 4  ;;  %3898 = vmatprep.mubr.msk.bf16.mxu0 %vm720_vm3, %v4731_v41  ;;  %v1878_v59 = vsel %vm4533_vm4, %v1873_v43, %v1877_v56  ;;  %vm1242_vm5 = vcmask 1042432   ;;  %vm1243_vm6 = vcmask 1046532  }
  0x43   : > { %3763 = vmatmul.mubr.msk.bf16.gmra.mrb[12].mxu1 %vm720_vm3, %v4731_v41  ;;  %v485_v12 = vor.u32 %v484_v48, %v481_v47  ;;  %v495_v21 = vor.u32 %v494_v53, %v490_v51  ;;  %v500_v27 = vrot.slane %v498_v54, 5  ;;  %vm4750_vm7 = vmor %vm1242_vm5, %vm1243_vm6  ;;  %v3405_v22 = vrot.slane %v4511_v14, 9  ;;  %v4760_v47 = vld [vmem:[%s4479_s24 + $0x8c] sm:$0x1] }
  0x44   : > { %v1888_v10 = vsel %vm4533_vm4, %v1883_v50, %v1887_v24  ;;  %v1254_v56 = vrot.slane %v4514_v15, 5  ;;  %v503_v36 = vshrl.u32 %v4737_v39, 16  ;;  %v506_v24 = vshll.u32 %v4737_v39, 16 }
  0x45   : > { %v4755_v25 = vcombine.low %v1878_v59, %v1888_v10  ;;  %v486_v33 = vrot.slane %v485_v12, 4  ;;  %v496_v43 = vrot.slane %v495_v21, 4  ;;  %v512_v48 = vshll.u32 %v4746_v13, 16 }
  0x46   : > { %v516_v50 = vshrl.u32 %v4746_v13, 16  ;;  %v1255_v53 = vsel %vm4750_vm7, %v3405_v22, %v1254_v56  ;;  %v1256_v54 = vrot.slane %v1254_v56, 4  ;;  %v505_v15 = vrot.slane %v503_v36, 4 }
  0x47   : > { %5635 = vst [vmem:[#allocation18_spill] sm:$0xff] %v4755_v25  ;;  %v491_v14 = vsel %vm4533_vm4, %v486_v33, %v490_v51  ;;  %3899 = vmatmul.mubr.msk.bf16.gmra.mrb[12].mxu0 %vm720_vm3, %v4755_v25  ;;  %v501_v59 = vsel %vm4533_vm4, %v496_v43, %v500_v27  ;;  %v508_v12 = vrot.slane %v506_v24, 5  ;;  %v514_v10 = vrot.slane %v512_v48, 5  ;;  %v4787_v48 = vld [vmem:[%s4479_s24 + $0x94] sm:$0xf] }
  0x48   : > { %v518_v21 = vrot.slane %v516_v50, 4  ;;  %v3348_v61 = vcombine.low %v491_v14, %v501_v59  ;;  %v1258_v51 = vsel %vm4750_vm7, %v1256_v54, %v1257_v42  ;;  %v522_v22 = vshll.u32 %v4760_v47, 16 }
  0x49   : > { %v3406_v33 = vrot.slane %v4529_v30, 9  ;;  %v4782_v56 = vcombine.low %v1255_v53, %v1258_v51  ;;  %v509_v36 = vor.u32 %v508_v12, %v505_v15  ;;  %v5637_v43 = vrot.slane %v4542_v40, 5  ;;  %v4797_v53 = vld [vmem:[%s4479_s24 + $0x98] sm:$0x1] }
  0x4a   : > { %v519_v27 = vor.u32 %v518_v21, %v514_v10  ;;  %3766 = vmatprep.mubr.msk.bf16.mxu1 %vm720_vm3, %v3348_v61  ;;  %v524_v50 = vrot.slane %v522_v22, 5  ;;  %v2368_v14 = vsel %vm769_vm0, %v4628_v9, 0  ;;  %v527_v54 = vshrl.u32 %v4774_v62, 16 }
  0x4b   : > { %5636 = vst [vmem:[#allocation19_spill] sm:$0xff] %v4782_v56  ;;  %v1263_v24 = vrot.slane %v5637_v43, 4  ;;  %v5638_v20 = vmov %v5637_v43  ;;  %3920 = vmatprep.mubr.msk.bf16.mxu0 %vm720_vm3, %v4782_v56  ;;  %v510_v15 = vrot.slane %v509_v36, 4  ;;  %v5639_v59 = vrot.slane %v4547_v44, 5 }
  0x4c   : > { %v1262_v42 = vsel %vm4750_vm7, %v3406_v33, %v5638_v20  ;;  %v520_v61 = vrot.slane %v519_v27, 4  ;;  %v530_v21 = vshll.u32 %v4774_v62, 16  ;;  %v529_v9 = vrot.slane %v527_v54, 4  ;;  %v4820_v20 = vld [vmem:[%s4479_s24 + $0xa0] sm:$0xf] }
  0x4d   : > { %v1265_v12 = vsel %vm4750_vm7, %v1263_v24, %v5639_v59  ;;  %v536_v22 = vshll.u32 %v4787_v48, 16  ;;  %v540_v33 = vshrl.u32 %v4787_v48, 16  ;;  %v515_v43 = vsel %vm4533_vm4, %v510_v15, %v514_v10  ;;  %v4817_v24 = vld [vmem:[%s4479_s24 + $0x9c] sm:$0xf]  ;;  %v4828_v10 = vld [vmem:[%s5578_s1 + $0xe] sm:$0x3] }
  0x4e   : > { %v4807_v51 = vcombine.low %v1262_v42, %v1265_v12  ;;  %v525_v36 = vsel %vm4533_vm4, %v520_v61, %v524_v50  ;;  %v532_v27 = vrot.slane %v530_v21, 5  ;;  %v546_v44 = vshll.u32 %v4797_v53, 16  ;;  %5642 = vst [vmem:[#allocation22_spill] sm:$0xff] %v4828_v10 }
  0x4f   : > { %v4822_v42 = vcombine.low %v515_v43, %v525_v36  ;;  %v538_v54 = vrot.slane %v536_v22, 5  ;;  %v542_v59 = vrot.slane %v540_v33, 4  ;;  %v3407_v12 = vrot.slane %v4559_v58, 9  ;;  %v4837_v33 = vld [vmem:[%s4479_s24 + $0xa4] sm:$0x1] }
  0x50   : > { %5640 = vst [vmem:[#allocation20_spill] sm:$0xff] %v4807_v51  ;;  %3921 = vmatmul.mubr.msk.bf16.vlgmr.msra.gmra.mrb[0].mxu0 %vm720_vm3, %v4807_v51  ;;  %v533_v50 = vor.u32 %v532_v27, %v529_v9  ;;  %v548_v15 = vrot.slane %v546_v44, 5  ;;  %v1268_v61 = vrot.slane %v4567_v63, 5  ;;  %v1271_v21 = vrot.slane %v4572_v7, 5 }
  0x51   : > { %5641 = vst [vmem:[#allocation21_spill] sm:$0xff] %v4822_v42  ;;  %3767 = vmatmul.mubr.msk.bf16.gmra.mrb[16].mxu1 %vm720_vm3, %v4822_v42  ;;  %3953 = vmatpush3.bf16.msra.mxu0 %v2368_v14  ;;  %v543_v22 = vor.u32 %v542_v59, %v538_v54  ;;  %v551_v43 = vshrl.u32 %v4817_v24, 16  ;;  %v554_v36 = vshll.u32 %v4817_v24, 16  ;;  %v560_v4 = vshll.u32 %v4820_v20, 16 }
  0x52   : > { %v534_v9 = vrot.slane %v533_v50, 4  ;;  %v1269_v27 = vsel %vm4750_vm7, %v3407_v12, %v1268_v61  ;;  %v1270_v44 = vrot.slane %v1268_v61, 4  ;;  %v564_v7 = vshrl.u32 %v4820_v20, 16  ;;  %4340 = vmatprep.subr.msk.bf16.mxu0 %vm769_vm0, %v4828_v10  ;;  %v4853_v61 = vld [vmem:[%s4479_s24 + $0xa8] sm:$0xf] }
  0x53   : > { %v544_v14 = vrot.slane %v543_v22, 4  ;;  %v553_v59 = vrot.slane %v551_v43, 4  ;;  %v556_v42 = vrot.slane %v554_v36, 5  ;;  %v562_v25 = vrot.slane %v560_v4, 5  ;;  %v4861_v43 = vld [vmem:[%s4479_s24 + $0xac] sm:$0xf] }
  0x54   : > { %v539_v41 = vsel %vm4533_vm4, %v534_v9, %v538_v54  ;;  %v1272_v50 = vsel %vm4750_vm7, %v1270_v44, %v1271_v21  ;;  %v566_v2 = vrot.slane %v564_v7, 4  ;;  %v570_v12 = vshll.u32 %v4837_v33, 16 }
  0x55   : > { %v549_v19 = vsel %vm4533_vm4, %v544_v14, %v548_v15  ;;  %v4857_v38 = vcombine.low %v1269_v27, %v1272_v50  ;;  %v557_v22 = vor.u32 %v556_v42, %v553_v59  ;;  %v3408_v4 = vrot.slane %v4575_v8, 9  ;;  %v4870_v15 = vld [vmem:[%s4479_s24 + $0xb0] sm:$0x1] }
  0x56   : > { %v4863_v54 = vcombine.low %v539_v41, %v549_v19  ;;  %v567_v36 = vor.u32 %v566_v2, %v562_v25  ;;  %v572_v21 = vrot.slane %v570_v12, 5  ;;  %v1275_v9 = vrot.slane %v4586_v23, 5 }
  0x57   : > { %5643 = vst [vmem:[#allocation23_spill] sm:$0xff] %v4857_v38  ;;  %3924 = vmatprep.mubr.msk.bf16.mxu0 %vm720_vm3, %v4857_v38  ;;  %v558_v44 = vrot.slane %v557_v22, 4  ;;  %v1278_v7 = vrot.slane %v4592_v29, 5  ;;  %v575_v42 = vshrl.u32 %v4853_v61, 16  ;;  %v578_v27 = vshll.u32 %v4853_v61, 16 }
  0x58   : > { %5644 = vst [vmem:[#allocation24_spill] sm:$0xff] %v4863_v54  ;;  %3770 = vmatprep.mubr.msk.bf16.mxu1 %vm720_vm3, %v4863_v54  ;;  %v568_v19 = vrot.slane %v567_v36, 4  ;;  %v1276_v2 = vsel %vm4750_vm7, %v3408_v4, %v1275_v9  ;;  %v1277_v41 = vrot.slane %v1275_v9, 4  ;;  %v584_v14 = vshll.u32 %v4861_v43, 16  ;;  %v4888_v9 = vld [vmem:[%s4479_s24 + $0xb4] sm:$0xf] }
  0x59   : > { %v563_v29 = vsel %vm4533_vm4, %v558_v44, %v562_v25  ;;  %v577_v59 = vrot.slane %v575_v42, 4  ;;  %v580_v50 = vrot.slane %v578_v27, 5  ;;  %v588_v12 = vshrl.u32 %v4861_v43, 16  ;;  %v4895_v42 = vld [vmem:[%s4479_s24 + $0xb8] sm:$0xf]  ;;  %v5675_v31 = vld [vmem:[#allocation21_spill] sm:$0xff] }
  0x5a   : > { %v573_v22 = vsel %vm4533_vm4, %v568_v19, %v572_v21  ;;  %v1279_v36 = vsel %vm4750_vm7, %v1277_v41, %v1278_v7  ;;  %v586_v54 = vrot.slane %v584_v14, 5  ;;  %v594_v4 = vshll.u32 %v4870_v15, 16  ;;  %v4905_v14 = vld [vmem:[%s4479_s24 + $0xbc] sm:$0x1] }
  0x5b   : > { %v4890_v11 = vcombine.low %v563_v29, %v573_v22  ;;  %v4892_v45 = vcombine.low %v1276_v2, %v1279_v36  ;;  %v581_v25 = vor.u32 %v580_v50, %v577_v59  ;;  %v590_v44 = vrot.slane %v588_v12, 4 }
  0x5c   : > { %v596_v27 = vrot.slane %v594_v4, 5  ;;  %v3409_v21 = vrot.slane %v4596_v37, 9  ;;  %v1282_v19 = vrot.slane %v4606_v49, 5  ;;  %v1285_v7 = vrot.slane %v4616_v57, 5 }
  0x5d   : > { %5645 = vst [vmem:[#allocation25_spill] sm:$0xff] %v4890_v11  ;;  %5646 = vst [vmem:[#allocation26_spill] sm:$0xff] %v4892_v45  ;;  %3771 = vmatmul.mubr.msk.bf16.gmra.mrb[20].mxu1 %vm720_vm3, %v4890_v11  ;;  %3925 = vmatmul.mubr.msk.bf16.gmra.mrb[4].mxu0 %vm720_vm3, %v4892_v45  ;;  %v582_v41 = vrot.slane %v581_v25, 4  ;;  %v591_v2 = vor.u32 %v590_v44, %v586_v54  ;;  %v599_v29 = vshrl.u32 %v4888_v9, 16  ;;  %v602_v59 = vshll.u32 %v4888_v9, 16 }
  0x5e   : > { %v1283_v50 = vsel %vm4750_vm7, %v3409_v21, %v1282_v19  ;;  %v1284_v12 = vrot.slane %v1282_v19, 4  ;;  %v608_v57 = vshll.u32 %v4895_v42, 16  ;;  %v612_v22 = vshrl.u32 %v4895_v42, 16  ;;  %v4919_v19 = vld [vmem:[%s4479_s24 + $0xc0] sm:$0xf] }
  0x5f   : > { %v587_v36 = vsel %vm4533_vm4, %v582_v41, %v586_v54  ;;  %v592_v4 = vrot.slane %v591_v2, 4  ;;  %v601_v25 = vrot.slane %v599_v29, 4  ;;  %v604_v44 = vrot.slane %v602_v59, 5  ;;  %v4927_v41 = vld [vmem:[%s4479_s24 + $0xc4] sm:$0xf] }
  0x60   : > { %v1286_v11 = vsel %vm4750_vm7, %v1284_v12, %v1285_v7  ;;  %v610_v17 = vrot.slane %v608_v57, 5  ;;  %v614_v45 = vrot.slane %v612_v22, 4  ;;  %v618_v21 = vshll.u32 %v4905_v14, 16 }
  0x61   : > { %v597_v38 = vsel %vm4533_vm4, %v592_v4, %v596_v27  ;;  %v4923_v51 = vcombine.low %v1283_v50, %v1286_v11  ;;  %v605_v56 = vor.u32 %v604_v44, %v601_v25  ;;  %v3410_v54 = vrot.slane %v4620_v60, 9  ;;  %v4936_v27 = vld [vmem:[%s4479_s24 + $0xc8] sm:$0x1] }
  0x62   : > { %v4929_v2 = vcombine.low %v587_v36, %v597_v38  ;;  %v615_v7 = vor.u32 %v614_v45, %v610_v17  ;;  %v620_v29 = vrot.slane %v618_v21, 5  ;;  %v1289_v59 = vrot.slane %v4634_v16, 5 }
  0x63   : > { %5647 = vst [vmem:[#allocation27_spill] sm:$0xff] %v4923_v51  ;;  %3928 = vmatprep.mubr.msk.bf16.mxu0 %vm720_vm3, %v4923_v51  ;;  %v606_v12 = vrot.slane %v605_v56, 4  ;;  %v1292_v57 = vrot.slane %v4647_v26, 5  ;;  %v623_v11 = vshrl.u32 %v4919_v19, 16  ;;  %v626_v50 = vshll.u32 %v4919_v19, 16 }
  0x64   : > { %5648 = vst [vmem:[#allocation28_spill] sm:$0xff] %v4929_v2  ;;  %3774 = vmatprep.mubr.msk.bf16.mxu1 %vm720_vm3, %v4929_v2  ;;  %v616_v45 = vrot.slane %v615_v7, 4  ;;  %v1290_v38 = vsel %vm4750_vm7, %v3410_v54, %v1289_v59  ;;  %v1291_v22 = vrot.slane %v1289_v59, 4  ;;  %v632_v56 = vshll.u32 %v4927_v41, 16  ;;  %v4954_v59 = vld [vmem:[%s4479_s24 + $0xcc] sm:$0xf] }
  0x65   : > { %v611_v26 = vsel %vm4533_vm4, %v606_v12, %v610_v17  ;;  %v625_v36 = vrot.slane %v623_v11, 4  ;;  %v628_v4 = vrot.slane %v626_v50, 5  ;;  %v636_v25 = vshrl.u32 %v4927_v41, 16  ;;  %v4961_v11 = vld [vmem:[%s4479_s24 + $0xd0] sm:$0xf] }
  0x66   : > { %v621_v44 = vsel %vm4533_vm4, %v616_v45, %v620_v29  ;;  %v1293_v21 = vsel %vm4750_vm7, %v1291_v22, %v1292_v57  ;;  %v634_v7 = vrot.slane %v632_v56, 5  ;;  %v642_v54 = vshll.u32 %v4936_v27, 16  ;;  %v4971_v56 = vld [vmem:[%s4479_s24 + $0xd4] sm:$0x1] }
  0x67   : > { %v4956_v2 = vcombine.low %v611_v26, %v621_v44  ;;  %v4958_v51 = vcombine.low %v1290_v38, %v1293_v21  ;;  %v629_v17 = vor.u32 %v628_v4, %v625_v36  ;;  %v638_v12 = vrot.slane %v636_v25, 4 }
  0x68   : > { %v644_v50 = vrot.slane %v642_v54, 5  ;;  %v3411_v29 = vrot.slane %v4651_v28, 9  ;;  %v1296_v45 = vrot.slane %v4659_v46, 5  ;;  %v1299_v57 = vrot.slane %v4671_v55, 5 }
  0x69   : > { %5649 = vst [vmem:[#allocation29_spill] sm:$0xff] %v4956_v2  ;;  %5650 = vst [vmem:[#allocation30_spill] sm:$0xff] %v4958_v51  ;;  %3775 = vmatmul.mubr.msk.bf16.gmra.mrb[24].mxu1 %vm720_vm3, %v4956_v2  ;;  %3929 = vmatmul.mubr.msk.bf16.gmra.mrb[8].mxu0 %vm720_vm3, %v4958_v51  ;;  %v630_v22 = vrot.slane %v629_v17, 4  ;;  %v639_v38 = vor.u32 %v638_v12, %v634_v7  ;;  %v647_v26 = vshrl.u32 %v4954_v59, 16  ;;  %v650_v36 = vshll.u32 %v4954_v59, 16 }
  0x6a   : > { %v1297_v4 = vsel %vm4750_vm7, %v3411_v29, %v1296_v45  ;;  %v1298_v25 = vrot.slane %v1296_v45, 4  ;;  %v656_v55 = vshll.u32 %v4961_v11, 16  ;;  %v660_v44 = vshrl.u32 %v4961_v11, 16 }
  0x6b   : > { %v635_v21 = vsel %vm4533_vm4, %v630_v22, %v634_v7  ;;  %v640_v54 = vrot.slane %v639_v38, 4  ;;  %v649_v17 = vrot.slane %v647_v26, 4  ;;  %v652_v12 = vrot.slane %v650_v36, 5 }
  0x6c   : > { %v1300_v2 = vsel %vm4750_vm7, %v1298_v25, %v1299_v57  ;;  %v658_v51 = vrot.slane %v656_v55, 5  ;;  %v662_v10 = vrot.slane %v660_v44, 4  ;;  %v666_v52 = vshll.u32 %v4971_v56, 16 }
  0x6d   : > { %v645_v29 = vsel %vm4533_vm4, %v640_v54, %v644_v50  ;;  %v4986_v45 = vcombine.low %v1297_v4, %v1300_v2  ;;  %v653_v1 = vor.u32 %v652_v12, %v649_v17  ;;  %v3491_v28 = vrot.slane %v4676_v3, 9 }
  0x6e   : > { %v4989_v46 = vcombine.low %v635_v21, %v645_v29  ;;  %v663_v7 = vor.u32 %v662_v10, %v658_v51  ;;  %v668_v22 = vrot.slane %v666_v52, 5  ;;  %v2127_v38 = vrot.slane %v4682_v18, 5 }
  0x6f   : > { %3932 = vmatprep.mubr.msk.bf16.mxu0 %vm720_vm3, %v4986_v45  ;;  %v654_v57 = vrot.slane %v653_v1, 4  ;;  %v2130_v26 = vrot.slane %v4690_v34, 5  ;;  %v3413_v36 = vrot.slane %v4737_v39, 9  ;;  %v1310_v2 = vrot.slane %v4746_v13, 5 }
  0x70   : > { %3778 = vmatprep.mubr.msk.bf16.mxu1 %vm720_vm3, %v4989_v46  ;;  %v664_v50 = vrot.slane %v663_v7, 4  ;;  %v2128_v10 = vsel %vm4750_vm7, %v3491_v28, %v2127_v38  ;;  %v2129_v52 = vrot.slane %v2127_v38, 4  ;;  %v1313_v4 = vrot.slane %v4760_v47, 5 }
  0x71   : > { %v659_v25 = vsel %vm4533_vm4, %v654_v57, %v658_v51  ;;  %v3372_v34 = vcombine.low %v4495_v5, %v4498_v6  ;;  %v1311_v1 = vsel %vm4750_vm7, %v3413_v36, %v1310_v2  ;;  %v1312_v55 = vrot.slane %v1310_v2, 4 }
  0x72   : > { %v669_v44 = vsel %vm4533_vm4, %v664_v50, %v668_v22  ;;  %v2131_v21 = vsel %vm4750_vm7, %v2129_v52, %v2130_v26  ;;  %v3414_v28 = vrot.slane %v4774_v62, 9  ;;  %v1317_v47 = vrot.slane %v4787_v48, 5 }
  0x73   : > { %v5014_v54 = vcombine.low %v659_v25, %v669_v44  ;;  %v5016_v51 = vcombine.low %v2128_v10, %v2131_v21  ;;  %v1314_v5 = vsel %vm4750_vm7, %v1312_v55, %v1313_v4  ;;  %v1320_v6 = vrot.slane %v4797_v53, 5 }
  0x74   : > { %v5021_v17 = vcombine.low %v1311_v1, %v1314_v5  ;;  %v1319_v12 = vrot.slane %v1317_v47, 4  ;;  %v3415_v29 = vrot.slane %v4817_v24, 9  ;;  %v1324_v7 = vrot.slane %v4820_v20, 5 }
  0x75   : > { %3779 = vmatmul.mubr.msk.bf16.gmra.mrb[28].mxu1 %vm720_vm3, %v5014_v54  ;;  %3933 = vmatmul.mubr.msk.bf16.gmra.mrb[12].mxu0 %vm720_vm3, %v5016_v51  ;;  %v1327_v22 = vrot.slane %v4837_v33, 5  ;;  %v1318_v53 = vsel %vm4750_vm7, %v3414_v28, %v1317_v47  ;;  %v1331_v57 = vrot.slane %v4861_v43, 5  ;;  %v3416_v2 = vrot.slane %v4853_v61, 9  ;;  %v5060_v28 = vld [vmem:[%s5578_s1 + $0x6] sm:$0x3] }
  0x76   : > { %3784 = vmatprep.mubr.msk.bf16.mxu1 %vm720_vm3, %v3372_v34  ;;  %3936 = vmatprep.mubr.msk.bf16.mxu0 %vm720_vm3, %v5021_v17  ;;  %v1321_v38 = vsel %vm4750_vm7, %v1319_v12, %v1320_v6  ;;  %v1326_v26 = vrot.slane %v1324_v7, 4  ;;  %v1325_v36 = vsel %vm4750_vm7, %v3415_v29, %v1324_v7  ;;  %v1338_v33 = vrot.slane %v4895_v42, 5 }
  0x77   : > { %v5042_v50 = vcombine.low %v1318_v53, %v1321_v38  ;;  %v1333_v52 = vrot.slane %v1331_v57, 4  ;;  %v1334_v4 = vrot.slane %v4870_v15, 5  ;;  %v5049_v25 = vcombine.low %v4529_v30, %v4542_v40 }
  0x78   : > { %v1328_v10 = vsel %vm4750_vm7, %v1326_v26, %v1327_v22  ;;  %v3417_v34 = vrot.slane %v4888_v9, 9  ;;  %v1340_v1 = vrot.slane %v1338_v33, 4  ;;  %v1341_v55 = vrot.slane %v4905_v14, 5 }
  0x79   : > { %v1456_v44 = vsel %vm769_vm0, %v4721_v32, 0  ;;  %v5055_v21 = vcombine.low %v1325_v36, %v1328_v10  ;;  %v1332_v30 = vsel %vm4750_vm7, %v3416_v2, %v1331_v57  ;;  %v1335_v40 = vsel %vm4750_vm7, %v1333_v52, %v1334_v4 }
  0x7a   : > { %v1339_v32 = vsel %vm4750_vm7, %v3417_v34, %v1338_v33  ;;  %v1342_v15 = vsel %vm4750_vm7, %v1340_v1, %v1341_v55  ;;  %v1345_v14 = vrot.slane %v4927_v41, 5  ;;  %v1352_v47 = vrot.slane %v4961_v11, 5 }
  0x7b   : > { %v5082_v5 = vcombine.low %v4737_v39, %v4746_v13  ;;  %v5088_v6 = vcombine.low %v4559_v58, %v4567_v63  ;;  %v5090_v12 = vcombine.low %v1332_v30, %v1335_v40  ;;  %v5094_v29 = vcombine.low %v4575_v8, %v4586_v23  ;;  %v5651_v30 = vld [vmem:[#allocation11_spill] sm:$0xff]  ;;  %v5652_v40 = vld [vmem:[#allocation9_spill] sm:$0xff] }
  0x7c   : > { %v3418_v7 = vrot.slane %v4919_v19, 9  ;;  %v5097_v22 = vcombine.low %v1339_v32, %v1342_v15  ;;  %v1348_v39 = vrot.slane %v4936_v27, 5  ;;  %v5102_v13 = vcombine.low %v4774_v62, %v4787_v48  ;;  %v5147_v27 = vld [vmem:[%s4479_s24 + $0xd8] sm:$0xf] }
  0x7d   : > { %3785 = vmatmul.mubr.msk.bf16.vlgmr.msra.gmra.mrb[0].mxu1 %vm720_vm3, %v4539_v35  ;;  %3937 = vmatmul.mubr.msk.bf16.gmra.mrb[16].mxu0 %vm720_vm3, %v5042_v50  ;;  %v5106_v58 = vcombine.low %v4817_v24, %v4820_v20  ;;  %v1347_v63 = vrot.slane %v1345_v14, 4  ;;  %v5110_v53 = vcombine.low %v4853_v61, %v4861_v43  ;;  %v5114_v8 = vcombine.low %v4888_v9, %v4895_v42  ;;  %v5123_v20 = vld [vmem:[%s4479_s24 + $0xdc] sm:$0xf] }
  0x7e   : > { %3817 = vmatpush3.bf16.msra.mxu1 %v1456_v44  ;;  %3788 = vmatprep.mubr.msk.bf16.mxu1 %vm720_vm3, %v5049_v25  ;;  %v5118_v23 = vcombine.low %v4919_v19, %v4927_v41  ;;  %v3419_v62 = vrot.slane %v4954_v59, 9  ;;  %v1354_v48 = vrot.slane %v1352_v47, 4  ;;  %v1355_v24 = vrot.slane %v4971_v56, 5 }
  0x7f   : > { %3940 = vmatprep.mubr.msk.bf16.mxu0 %vm720_vm3, %v5055_v21  ;;  %4335 = vmatprep.subr.msk.bf16.mxu1 %vm769_vm0, %v5060_v28  ;;  %v5127_v61 = vcombine.low %v4954_v59, %v4961_v11  ;;  %v1346_v43 = vsel %vm4750_vm7, %v3418_v7, %v1345_v14  ;;  %v1349_v9 = vsel %vm4750_vm7, %v1347_v63, %v1348_v39  ;;  %v2134_v42 = vrot.slane %v5123_v20, 5  ;;  %v278_v59 = vld [vmem:[%s4479_s24 + $0xe0] sm:$0x1]  ;;  %v5653_v39 = vld [vmem:[#allocation14_spill] sm:$0xff] }
  0x80   : > { %v1353_v19 = vsel %vm4750_vm7, %v3419_v62, %v1352_v47  ;;  %v1356_v41 = vsel %vm4750_vm7, %v1354_v48, %v1355_v24  ;;  %v5152_v11 = vcombine.low %v4596_v37, %v4606_v49  ;;  %v5154_v56 = vcombine.low %v1346_v43, %v1349_v9  ;;  %v5654_v63 = vld [vmem:[#allocation13_spill] sm:$0xff] }
  0x81   : > { %v5158_v38 = vcombine.low %v4620_v60, %v4634_v16  ;;  %v5160_v57 = vcombine.low %v1353_v19, %v1356_v41  ;;  %v3492_v26 = vrot.slane %v5147_v27, 9  ;;  %v2136_v36 = vrot.slane %v2134_v42, 4  ;;  %v5205_v41 = vld [vmem:[%s5578_s1 + $0x10] sm:$0x3] }
  0x82   : > { %v2137_v2 = vrot.slane %v278_v59, 5  ;;  %v1890_v33 = vshrl.u32 %v5147_v27, 16  ;;  %v1893_v10 = vshll.u32 %v5147_v27, 16  ;;  %v1899_v52 = vshll.u32 %v5123_v20, 16 }
  0x83   : > { %v1903_v16 = vshrl.u32 %v5123_v20, 16  ;;  %v2135_v4 = vsel %vm4750_vm7, %v3492_v26, %v2134_v42  ;;  %v1909_v1 = vshll.u32 %v278_v59, 16  ;;  %v5181_v32 = vcombine.low %v5652_v40, %v5651_v30  ;;  %v5655_v42 = vld [vmem:[#allocation22_spill] sm:$0xff] }
  0x84   : > { %v1892_v37 = vrot.slane %v1890_v33, 4  ;;  %v1895_v49 = vrot.slane %v1893_v10, 5  ;;  %v1901_v60 = vrot.slane %v1899_v52, 5  ;;  %v2138_v34 = vsel %vm4750_vm7, %v2136_v36, %v2137_v2  ;;  %v4381_v59 = vld [vmem:[%s4479_s24 + $0x4] sm:$0xf] }
  0x85   : > { %3789 = vmatmul.mubr.msk.bf16.gmra.mrb[4].mxu1 %vm720_vm3, %v5088_v6  ;;  %3941 = vmatmul.mubr.msk.bf16.gmra.mrb[20].mxu0 %vm720_vm3, %v5090_v12  ;;  %v1905_v44 = vrot.slane %v1903_v16, 4  ;;  %v5183_v15 = vcombine.low %v2135_v4, %v2138_v34  ;;  %v1911_v7 = vrot.slane %v1909_v1, 5  ;;  %v3380_v62 = vcombine.low %v5654_v63, %v5653_v39  ;;  %v4382_v2 = vld [vmem:[%s4479_s24 + $0x8] sm:$0x1]  ;;  %v4383_v10 = vld [vmem:[%s4479_s24] sm:$0xf] }
  0x86   : > { %3792 = vmatprep.mubr.msk.bf16.mxu1 %vm720_vm3, %v5094_v29  ;;  %3944 = vmatprep.mubr.msk.bf16.mxu0 %vm720_vm3, %v5097_v22  ;;  %v1896_v55 = vor.u32 %v1895_v49, %v1892_v37  ;;  %v2626_v19 = vsel %vm769_vm0, %v5655_v42, 0  ;;  %v1247_v26 = vrot.slane %v4381_v59, 5  ;;  %v5228_v36 = vcombine.low %v4676_v3, %v4682_v18  ;;  %v5237_v49 = vld [vmem:[%s4479_s24 + $0x70] sm:$0xf]  ;;  %v249_v3 = vld [vmem:[%s4479_s24 + $0x6c] sm:$0xf] }
  0x87   : > { %v1906_v47 = vor.u32 %v1905_v44, %v1901_v60  ;;  %v1250_v33 = vrot.slane %v4382_v2, 5  ;;  %v3404_v52 = vrot.slane %v4383_v10, 9  ;;  %v2825_v18 = vrot.slane %v5237_v49, 5  ;;  %v5250_v4 = vld [vmem:[%s4479_s24 + $0x74] sm:$0x1]  ;;  %v5661_v10 = vld [vmem:[#allocation27_spill] sm:$0xff] }
  0x88   : > { %v1897_v14 = vrot.slane %v1896_v55, 4  ;;  %v1249_v37 = vrot.slane %v1247_v26, 4  ;;  %v3550_v34 = vrot.slane %v249_v3, 9  ;;  %v2828_v55 = vrot.slane %v5250_v4, 5  ;;  %v5660_v2 = vld [vmem:[#allocation16_spill] sm:$0xff] }
  0x89   : > { %v1907_v24 = vrot.slane %v1906_v47, 4  ;;  %v2827_v1 = vrot.slane %v2825_v18, 4  ;;  %v3513_v44 = vcombine.low %v249_v3, %v5237_v49  ;;  %v1303_v42 = vrot.slane %v5653_v39, 5  ;;  %v5308_v39 = vld [vmem:[%s4479_s24 + $0xe4] sm:$0xf] }
  0x8a   : > { %v1902_v48 = vsel %vm4533_vm4, %v1897_v14, %v1901_v60  ;;  %v1248_v60 = vsel %vm4750_vm7, %v3404_v52, %v1247_v26  ;;  %v1251_v16 = vsel %vm4750_vm7, %v1249_v37, %v1250_v33  ;;  %v5256_v40 = vsel %vm4750_vm7, %v3550_v34, %v2825_v18  ;;  %v5662_v52 = vld [vmem:[#allocation30_spill] sm:$0xff]  ;;  %v5664_v34 = vld [vmem:[#allocation8_spill] sm:$0xff] }
  0x8b   : > { %v1912_v43 = vsel %vm4533_vm4, %v1907_v24, %v1911_v7  ;;  %v3421_v30 = vcombine.low %v1248_v60, %v1251_v16  ;;  %v5260_v14 = vsel %vm4750_vm7, %v2827_v1, %v2828_v55  ;;  %v1670_v7 = vsel %vm769_vm0, %v5060_v28, 0  ;;  %v4384_v24 = vld [vmem:[%s5578_s1 + $0x8] sm:$0x3]  ;;  %v5658_v28 = vld [vmem:[#allocation23_spill] sm:$0xff] }
  0x8c   : > { %v5198_v9 = vcombine.low %v1902_v48, %v1912_v43  ;;  %v3553_v47 = vcombine.low %v5256_v40, %v5260_v14  ;;  %v5657_v48 = vld [vmem:[#allocation20_spill] sm:$0xff]  ;;  %v5659_v43 = vld [vmem:[#allocation26_spill] sm:$0xff]  ;;  %v3412_v59 = vrot.slane %v5654_v63, 9  ;;  %v1305_v26 = vrot.slane %v1303_v42, 4  ;;  %v5663_v60 = vld [vmem:[#allocation7_spill] sm:$0xff] }
  0x8d   : > { %3793 = vmatmul.mubr.msk.bf16.gmra.mrb[8].mxu1 %vm720_vm3, %v5152_v11  ;;  %3945 = vmatmul.mubr.msk.bf16.gmra.mrb[24].mxu0 %vm720_vm3, %v5154_v56  ;;  %v1306_v33 = vrot.slane %v5660_v2, 5  ;;  %v2852_v16 = vsel %vm769_vm0, %v5205_v41, 0  ;;  %v2564_v1 = vshrl.u32 %v249_v3, 16  ;;  %v2567_v55 = vshll.u32 %v249_v3, 16  ;;  %v5667_v3 = vld [vmem:[#allocation15_spill] sm:$0xff] }
  0x8e   : > { %3796 = vmatprep.mubr.msk.bf16.mxu1 %vm720_vm3, %v5158_v38  ;;  %3948 = vmatprep.mubr.msk.bf16.mxu0 %vm720_vm3, %v5160_v57  ;;  %vm3163_vm8 = vcmask 1041409   ;;  %vm4433_vm9 = vmmov (!%p3572_p5), 0  }
  0x8f   : > { %v1307_v63 = vsel %vm4750_vm7, %v1305_v26, %v1306_v33  ;;  %v2583_v26 = vshll.u32 %v5250_v4, 16 }
  0x95   : > { %3797 = vmatmul.mubr.msk.bf16.gmra.mrb[12].mxu1 %vm720_vm3, %v5181_v32  ;;  %3949 = vmatmul.mubr.msk.bf16.gmra.mrb[28].mxu0 %vm720_vm3, %v5183_v15 }
  0x96   : > { %3800 = vmatprep.mubr.msk.bf16.mxu1 %vm720_vm3, %v3380_v62  ;;  %3954 = vmatprep.mubr.msk.bf16.mxu0 %vm720_vm3, %v5049_v25  ;;  %v5656_v62 = vld [vmem:[#allocation19_spill] sm:$0xff] }
  0x9d   : > { %3801 = vmatmul.mubr.msk.bf16.gmra.mrb[16].mxu1 %vm720_vm3, %v5082_v5  ;;  %3955 = vmatmul.mubr.msk.bf16.vlgmr.msra.gmra.mrb[0].mxu0 %vm720_vm3, %v5088_v6 }
  0x9e   : > { %3987 = vmatpush3.bf16.msra.mxu0 %v2626_v19  ;;  %3804 = vmatprep.mubr.msk.bf16.mxu1 %vm720_vm3, %v5102_v13  ;;  %v5295_v19 = vcombine.low %v5147_v27, %v5123_v20  ;;  %v5311_v20 = vld [vmem:[%s4479_s24 + $0xe8] sm:$0xf]  ;;  %v1304_v27 = vsel %vm4750_vm7, %v3412_v59, %v1303_v42  ;;  %v5666_v42 = vld [vmem:[#allocation12_spill] sm:$0xff] }
  0x9f   : > { %3958 = vmatprep.mubr.msk.bf16.mxu0 %vm720_vm3, %v5094_v29  ;;  %4341 = vmatprep.subr.msk.bf16.mxu0 %vm769_vm0, %v5205_v41  ;;  %v3514_v37 = vcombine.low %v5308_v39, %v5311_v20  ;;  %v3429_v18 = vcombine.low %v1304_v27, %v1307_v63  ;;  %v2566_v41 = vrot.slane %v2564_v1, 4  ;;  %v2585_v27 = vrot.slane %v2583_v26, 5  ;;  %v5668_v63 = vld [vmem:[#allocation17_spill] sm:$0xff] }
  0xa0   : > { %v2588_v1 = vshrl.u32 %v5308_v39, 16 }
  0xa5   : > { %3805 = vmatmul.mubr.msk.bf16.gmra.mrb[20].mxu1 %vm720_vm3, %v5106_v58  ;;  %3959 = vmatmul.mubr.msk.bf16.gmra.mrb[4].mxu0 %vm720_vm3, %v5152_v11 }
  0xa6   : > { %3808 = vmatprep.mubr.msk.bf16.mxu1 %vm720_vm3, %v5110_v53  ;;  %3962 = vmatprep.mubr.msk.bf16.mxu0 %vm720_vm3, %v5158_v38 }
  0xad   : > { %3809 = vmatmul.mubr.msk.bf16.gmra.mrb[24].mxu1 %vm720_vm3, %v5114_v8  ;;  %3963 = vmatmul.mubr.msk.bf16.gmra.mrb[8].mxu0 %vm720_vm3, %v5181_v32 }
  0xae   : > { %3812 = vmatprep.mubr.msk.bf16.mxu1 %vm720_vm3, %v5118_v23  ;;  %3966 = vmatprep.mubr.msk.bf16.mxu0 %vm720_vm3, %v5228_v36 }
  0xb5   : > { %3813 = vmatmul.mubr.msk.bf16.gmra.mrb[28].mxu1 %vm720_vm3, %v5127_v61  ;;  %3967 = vmatmul.mubr.msk.bf16.gmra.mrb[12].mxu0 %vm720_vm3, %v3513_v44  ;;  %v2577_v44 = vshrl.u32 %v5237_v49, 16 }
  0xb6   : > { %3818 = vmatprep.mubr.msk.bf16.mxu1 %vm720_vm3, %v3421_v30  ;;  %3970 = vmatprep.mubr.msk.bf16.mxu0 %vm720_vm3, %v5102_v13  ;;  %v2573_v30 = vshll.u32 %v5237_v49, 16 }
  0xbd   : > { %3819 = vmatmul.mubr.msk.bf16.vlgmr.msra.gmra.mrb[0].mxu1 %vm720_vm3, %v5656_v62  ;;  %3971 = vmatmul.mubr.msk.bf16.gmra.mrb[16].mxu0 %vm720_vm3, %v5106_v58  ;;  %v2569_v62 = vrot.slane %v2567_v55, 5  ;;  %v2591_v55 = vshll.u32 %v5308_v39, 16 }
  0xbe   : > { %3851 = vmatpush3.bf16.msra.mxu1 %v1670_v7  ;;  %3822 = vmatprep.mubr.msk.bf16.mxu1 %vm720_vm3, %v5657_v48  ;;  %v5665_v7 = vld [vmem:[#allocation10_spill] sm:$0xff] }
  0xbf   : > { %3974 = vmatprep.mubr.msk.bf16.mxu0 %vm720_vm3, %v5110_v53  ;;  %4337 = vmatprep.subr.msk.bf16.mxu1 %vm769_vm0, %v4384_v24  ;;  %v2575_v24 = vrot.slane %v2573_v30, 5  ;;  %v2570_v49 = vor.u32 %v2569_v62, %v2566_v41  ;;  %v5672_v30 = vld [vmem:[#allocation6_spill] sm:$0xff]  ;;  %v2593_v41 = vrot.slane %v2591_v55, 5 }
  0xc1   : > { %v2571_v2 = vrot.slane %v2570_v49, 4 }
  0xc5   : > { %3823 = vmatmul.mubr.msk.bf16.gmra.mrb[4].mxu1 %vm720_vm3, %v5658_v28  ;;  %3975 = vmatmul.mubr.msk.bf16.gmra.mrb[20].mxu0 %vm720_vm3, %v5114_v8 }
  0xc6   : > { %3826 = vmatprep.mubr.msk.bf16.mxu1 %vm720_vm3, %v5659_v43  ;;  %3978 = vmatprep.mubr.msk.bf16.mxu0 %vm720_vm3, %v5118_v23 }
  0xcd   : > { %3827 = vmatmul.mubr.msk.bf16.gmra.mrb[8].mxu1 %vm720_vm3, %v5661_v10  ;;  %3979 = vmatmul.mubr.msk.bf16.gmra.mrb[24].mxu0 %vm720_vm3, %v5127_v61 }
  0xce   : > { %3830 = vmatprep.mubr.msk.bf16.mxu1 %vm720_vm3, %v5662_v52  ;;  %3982 = vmatprep.mubr.msk.bf16.mxu0 %vm720_vm3, %v5295_v19 }
  0xd5   : > { %3831 = vmatmul.mubr.msk.bf16.gmra.mrb[12].mxu1 %vm720_vm3, %v4986_v45  ;;  %3983 = vmatmul.mubr.msk.bf16.gmra.mrb[28].mxu0 %vm720_vm3, %v3514_v37  ;;  %v5669_v37 = vld [vmem:[#allocation18_spill] sm:$0xff] }
  0xd6   : > { %3834 = vmatprep.mubr.msk.bf16.mxu1 %vm720_vm3, %v3429_v18  ;;  %3988 = vmatprep.mubr.msk.bf16.mxu0 %vm720_vm3, %v5663_v60  ;;  %v2576_v18 = vsel %vm4533_vm4, %v2571_v2, %v2575_v24 }
  0xdd   : > { %3835 = vmatmul.mubr.msk.bf16.gmra.mrb[16].mxu1 %vm720_vm3, %v5021_v17  ;;  %3989 = vmatmul.mubr.msk.bf16.vlgmr.msra.gmra.mrb[0].mxu0 %vm720_vm3, %v5664_v34  ;;  %v2579_v17 = vrot.slane %v2577_v44, 4  ;;  %v5671_v34 = vld [vmem:[#allocation25_spill] sm:$0xff]  ;;  %v2601_v44 = vshrl.u32 %v5311_v20, 16 }
  0xde   : > { %4021 = vmatpush3.bf16.msra.mxu0 %v2852_v16  ;;  %3838 = vmatprep.mubr.msk.bf16.mxu1 %vm720_vm3, %v5042_v50  ;;  %v5670_v16 = vld [vmem:[#allocation24_spill] sm:$0xff] }
  0xdf   : > { %3992 = vmatprep.mubr.msk.bf16.mxu0 %vm720_vm3, %v5665_v7  ;;  %v2580_v59 = vor.u32 %v2579_v17, %v2575_v24  ;;  %v5673_v7 = vld [vmem:[#allocation28_spill] sm:$0xff]  ;;  %v2603_v24 = vrot.slane %v2601_v44, 4  ;;  %v281_v17 = vld [vmem:[%s4479_s24 + $0xec] sm:$0x1] }
  0xe0   : > { %v2607_v49 = vshll.u32 %v281_v17, 16 }
  0xe1   : > { %v2581_v33 = vrot.slane %v2580_v59, 4 }
  0xe2   : > { %v2609_v2 = vrot.slane %v2607_v49, 5 }
  0xe3   : > { %v2586_v4 = vsel %vm4533_vm4, %v2581_v33, %v2585_v27 }
  0xe4   : > { %v3532_v60 = vcombine.low %v2576_v18, %v2586_v4 }
  0xe5   : > { %3839 = vmatmul.mubr.msk.bf16.gmra.mrb[20].mxu1 %vm720_vm3, %v5055_v21  ;;  %3993 = vmatmul.mubr.msk.bf16.gmra.mrb[4].mxu0 %vm720_vm3, %v5666_v42  ;;  %v5674_v42 = vld [vmem:[#allocation29_spill] sm:$0xff] }
  0xe6   : > { %3842 = vmatprep.mubr.msk.bf16.mxu1 %vm720_vm3, %v5090_v12  ;;  %3996 = vmatprep.mubr.msk.bf16.mxu0 %vm720_vm3, %v5667_v3 }
  0xed   : > { %3843 = vmatmul.mubr.msk.bf16.gmra.mrb[24].mxu1 %vm720_vm3, %v5097_v22  ;;  %3997 = vmatmul.mubr.msk.bf16.gmra.mrb[8].mxu0 %vm720_vm3, %v5668_v63 }
  0xee   : > { %3846 = vmatprep.mubr.msk.bf16.mxu1 %vm720_vm3, %v5154_v56  ;;  %4000 = vmatprep.mubr.msk.bf16.mxu0 %vm720_vm3, %v5669_v37 }
  0xf5   : > { %3847 = vmatmul.mubr.msk.bf16.gmra.mrb[28].mxu1 %vm720_vm3, %v5160_v57  ;;  %4001 = vmatmul.mubr.msk.bf16.gmra.mrb[12].mxu0 %vm720_vm3, %v3532_v60 }
  0xf6   : > { %3852 = vmatprep.mubr.msk.bf16.mxu1 %vm720_vm3, %v4539_v35  ;;  %4004 = vmatprep.mubr.msk.bf16.mxu0 %vm720_vm3, %v5670_v16  ;;  %v2597_v35 = vshll.u32 %v5311_v20, 16 }
  0xf8   : > { %v2599_v62 = vrot.slane %v2597_v35, 5 }
  0xfa   : > { %v2604_v3 = vor.u32 %v2603_v24, %v2599_v62 }
  0xfc   : > { %v2605_v26 = vrot.slane %v2604_v3, 4 }
  0xfd   : > { %3853 = vmatmul.mubr.msk.bf16.vlgmr.msra.gmra.mrb[0].mxu1 %vm720_vm3, %v5049_v25  ;;  %4005 = vmatmul.mubr.msk.bf16.gmra.mrb[16].mxu0 %vm720_vm3, %v5671_v34  ;;  %v2590_v25 = vrot.slane %v2588_v1, 4 }
  0xfe   : > { %4075 = vmatpush3.bf16.msra.mxu1 %v5672_v30  ;;  %3856 = vmatprep.mubr.msk.bf16.mxu1 %vm720_vm3, %v5088_v6 }
  0xff   : > { %4008 = vmatprep.mubr.msk.bf16.mxu0 %vm720_vm3, %v5673_v7  ;;  %v2594_v6 = vor.u32 %v2593_v41, %v2590_v25 }
 0x101   : > { %v2595_v59 = vrot.slane %v2594_v6, 4 }
 0x105   : > { %3857 = vmatmul.mubr.msk.bf16.gmra.mrb[4].mxu1 %vm720_vm3, %v5094_v29  ;;  %4009 = vmatmul.mubr.msk.bf16.gmra.mrb[20].mxu0 %vm720_vm3, %v5674_v42  ;;  %v2600_v29 = vsel %vm4533_vm4, %v2595_v59, %v2599_v62 }
 0x106   : > { %3860 = vmatprep.mubr.msk.bf16.mxu1 %vm720_vm3, %v5152_v11  ;;  %4012 = vmatprep.mubr.msk.bf16.mxu0 %vm720_vm3, %v4989_v46  ;;  %v2610_v11 = vsel %vm4533_vm4, %v2605_v26, %v2609_v2 }
 0x107   : > { %v3533_v33 = vcombine.low %v2600_v29, %v2610_v11 }
 0x10d   : > { %3861 = vmatmul.mubr.msk.bf16.gmra.mrb[8].mxu1 %vm720_vm3, %v5158_v38  ;;  %4013 = vmatmul.mubr.msk.bf16.gmra.mrb[24].mxu0 %vm720_vm3, %v5014_v54 }
 0x10e   : > { %3864 = vmatprep.mubr.msk.bf16.mxu1 %vm720_vm3, %v5181_v32  ;;  %4016 = vmatprep.mubr.msk.bf16.mxu0 %vm720_vm3, %v5198_v9 }
 0x115   : > { %3865 = vmatmul.mubr.msk.bf16.gmra.mrb[12].mxu1 %vm720_vm3, %v5228_v36  ;;  %4017 = vmatmul.mubr.msk.bf16.gmra.mrb[28].mxu0 %vm720_vm3, %v3533_v33 }
 0x116   : > { %3868 = vmatprep.mubr.msk.bf16.mxu1 %vm720_vm3, %v5082_v5  ;;  %4022 = vmatprep.mubr.msk.bf16.mxu0 %vm720_vm3, %v5657_v48 }
 0x11d   : > { %3869 = vmatmul.mubr.msk.bf16.gmra.mrb[16].mxu1 %vm720_vm3, %v5102_v13  ;;  %4023 = vmatmul.mubr.msk.bf16.vlgmr.msra.gmra.mrb[0].mxu0 %vm720_vm3, %v5658_v28 }
 0x11e   : > { %3872 = vmatprep.mubr.msk.bf16.mxu1 %vm720_vm3, %v5106_v58  ;;  %4026 = vmatprep.mubr.msk.bf16.mxu0 %vm720_vm3, %v5659_v43 }
 0x125   : > { %3873 = vmatmul.mubr.msk.bf16.gmra.mrb[20].mxu1 %vm720_vm3, %v5110_v53  ;;  %4027 = vmatmul.mubr.msk.bf16.gmra.mrb[4].mxu0 %vm720_vm3, %v5661_v10 }
 0x126   : > { %3876 = vmatprep.mubr.msk.bf16.mxu1 %vm720_vm3, %v5114_v8  ;;  %4030 = vmatprep.mubr.msk.bf16.mxu0 %vm720_vm3, %v5662_v52 }
 0x12d   : > { %3877 = vmatmul.mubr.msk.bf16.gmra.mrb[24].mxu1 %vm720_vm3, %v5118_v23  ;;  %4031 = vmatmul.mubr.msk.bf16.gmra.mrb[8].mxu0 %vm720_vm3, %v4986_v45  ;;  %v2832_v45 = vrot.slane %v5311_v20, 5 }
 0x12e   : > { %3880 = vmatprep.mubr.msk.bf16.mxu1 %vm720_vm3, %v5127_v61  ;;  %4034 = vmatprep.mubr.msk.bf16.mxu0 %vm720_vm3, %v5016_v51  ;;  %v3551_v51 = vrot.slane %v5308_v39, 9 }
 0x130   : > { %v2833_v5 = vsel %vm4750_vm7, %v3551_v51, %v2832_v45 }
 0x135   : > { %3881 = vmatmul.mubr.msk.bf16.gmra.mrb[28].mxu1 %vm720_vm3, %v5295_v19  ;;  %4035 = vmatmul.mubr.msk.bf16.gmra.mrb[12].mxu0 %vm720_vm3, %v3553_v47  ;;  %v5482_v47 = vld [vmem:[%s5579_s2] ss:$0 sm:$0xff] }
 0x136   : > { %3902 = vmatprep.mubr.msk.bf16.mxu1 %vm720_vm3, %v5675_v31  ;;  %4038 = vmatprep.mubr.msk.bf16.mxu0 %vm720_vm3, %v5042_v50  ;;  %v2834_v50 = vrot.slane %v2832_v45, 4 }
 0x13d   : > { %3903 = vmatmul.mubr.msk.bf16.vlgmr.msra.gmra.mrb[16].mxu1 %vm720_vm3, %v5670_v16  ;;  %4039 = vmatmul.mubr.msk.bf16.gmra.mrb[16].mxu0 %vm720_vm3, %v5055_v21  ;;  %v2835_v21 = vrot.slane %v281_v17, 5 }
 0x13e   : > { %3906 = vmatprep.mubr.msk.bf16.mxu1 %vm720_vm3, %v5671_v34  ;;  %4042 = vmatprep.mubr.msk.bf16.mxu0 %vm720_vm3, %v5090_v12 }
 0x13f   : > { %v2836_v12 = vsel %vm4750_vm7, %v2834_v50, %v2835_v21 }
 0x145   : > { %3907 = vmatmul.mubr.msk.bf16.gmra.mrb[20].mxu1 %vm720_vm3, %v5673_v7  ;;  %4043 = vmatmul.mubr.msk.bf16.gmra.mrb[20].mxu0 %vm720_vm3, %v5097_v22  ;;  %v3554_v22 = vcombine.low %v2833_v5, %v2836_v12 }
 0x146   : > { %3910 = vmatprep.mubr.msk.bf16.mxu1 %vm720_vm3, %v5674_v42  ;;  %4046 = vmatprep.mubr.msk.bf16.mxu0 %vm720_vm3, %v5154_v56 }
 0x14d   : > { %3911 = vmatmul.mubr.msk.bf16.gmra.mrb[24].mxu1 %vm720_vm3, %v4989_v46  ;;  %4047 = vmatmul.mubr.msk.bf16.gmra.mrb[24].mxu0 %vm720_vm3, %v5160_v57 }
 0x14e   : > { %3914 = vmatprep.mubr.msk.bf16.mxu1 %vm720_vm3, %v5014_v54  ;;  %4050 = vmatprep.mubr.msk.bf16.mxu0 %vm720_vm3, %v5183_v15 }
 0x155   : > { %3915 = vmatmul.mubr.msk.bf16.gmra.mrb[28].mxu1 %vm720_vm3, %v5198_v9  ;;  %4051 = vmatmul.mubr.msk.bf16.gmra.mrb[28].mxu0 %vm720_vm3, %v3554_v22 }
 0x1d0   : > { %v3854_v46 = vpop.f32.mrb[0].mxu1 }
 0x1d1   : > { %v1706_v13 = vpop.f32.mrb[1].mxu1 }
 0x1d2   : > { %v3855_v58 = vpop.f32.mrb[2].mxu1 }
 0x1d3   : > { %v1709_v53 = vpop.f32.mrb[3].mxu1 }
 0x1d8   : > { %v3858_v54 = vpop.f32.mrb[4].mxu1 }
 0x1d9   : > { %v1722_v8 = vpop.f32.mrb[5].mxu1 }
 0x1da   : > { %v3859_v23 = vpop.f32.mrb[6].mxu1 }
 0x1db   : > { %v1725_v61 = vpop.f32.mrb[7].mxu1 }
 0x1e0   : > { %v3862_v56 = vpop.f32.mrb[8].mxu1 }
 0x1e1   : > { %v1738_v38 = vpop.f32.mrb[9].mxu1 }
 0x1e2   : > { %v3863_v57 = vpop.f32.mrb[10].mxu1 }
 0x1e3   : > { %v1741_v32 = vpop.f32.mrb[11].mxu1 }
 0x1e8   : > { %v3866_v0 = vpop.f32.mrb[12].mxu1 }
 0x1e9   : > { %v5473_v15 = vpop.f32.mrb[13].mxu1 }
 0x1ea   : > { %v5475_v36 = vpop.f32.mrb[14].mxu1 }
 0x1eb   : > { %v5477_v9 = vpop.f32.mrb[15].mxu1 }
 0x1f0   : > { %v4024_v40 = vpop.f32.mrb[0].mxu0 }
 0x1f1   : > { %v4076_v14 = vadd.f32 %v4024_v40, %v3854_v46  ;;  %v2888_v48 = vpop.f32.mrb[1].mxu0 }
 0x1f2   : > { %v4077_v28 = vadd.f32 %v2888_v48, %v1706_v13  ;;  %v4025_v43 = vpop.f32.mrb[2].mxu0 }
 0x1f3   : > { %v4078_v19 = vadd.f32 %v4025_v43, %v3855_v58  ;;  %v2891_v10 = vpop.f32.mrb[3].mxu0  ;;  %v3056_v20 = vadd.f32 %v4076_v14, %v5482_v47 }
 0x1f4   : > { %v3054_v52 = vadd.f32 %v4077_v28, %v5482_v47  ;;  %v4079_v39 = vadd.f32 %v2891_v10, %v1709_v53 }
 0x1f5   : > { %v3057_v37 = vadd.f32 %v4078_v19, %v5482_v47  ;;  %v3088_v34 = vmax.f32 %v3056_v20, 0.0 }
 0x1f6   : > { %v3055_v27 = vadd.f32 %v4079_v39, %v5482_v47  ;;  %v3086_v63 = vmax.f32 %v3054_v52, 0.0 }
 0x1f7   : > { %v3089_v7 = vmax.f32 %v3057_v37, 0.0 }
 0x1f8   : > { %v3087_v18 = vmax.f32 %v3055_v27, 0.0  ;;  %v4028_v4 = vpop.f32.mrb[4].mxu0 }
 0x1f9   : > { %v4080_v60 = vadd.f32 %v4028_v4, %v3858_v54  ;;  %v2904_v16 = vpop.f32.mrb[5].mxu0 }
 0x1fa   : > { %v3119_v1 = vadd.f32 %v3087_v18, %v3086_v63  ;;  %v4081_v55 = vadd.f32 %v2904_v16, %v1722_v8  ;;  %v4029_v44 = vpop.f32.mrb[6].mxu0 }
 0x1fb   : > { %v4082_v30 = vadd.f32 %v4029_v44, %v3859_v23  ;;  %v2907_v35 = vpop.f32.mrb[7].mxu0  ;;  %v3060_v24 = vadd.f32 %v4080_v60, %v5482_v47 }
 0x1fc   : > { %v3120_v25 = vadd.f32 %v3119_v1, %v3088_v34  ;;  %v3058_v41 = vadd.f32 %v4081_v55, %v5482_v47  ;;  %v4083_v62 = vadd.f32 %v2907_v35, %v1725_v61 }
 0x1fd   : > { %v3061_v49 = vadd.f32 %v4082_v30, %v5482_v47  ;;  %v3092_v11 = vmax.f32 %v3060_v24, 0.0 }
 0x1fe   : > { %v3090_v17 = vmax.f32 %v3058_v41, 0.0  ;;  %v3121_v42 = vadd.f32 %v3120_v25, %v3089_v7  ;;  %v3059_v6 = vadd.f32 %v4083_v62, %v5482_v47 }
 0x1ff   : > { %v3093_v21 = vmax.f32 %v3061_v49, 0.0 }
 0x200   : > { %v3122_v3 = vadd.f32 %v3121_v42, %v3090_v17  ;;  %v3091_v59 = vmax.f32 %v3059_v6, 0.0  ;;  %v4032_v26 = vpop.f32.mrb[8].mxu0 }
 0x201   : > { %v4084_v2 = vadd.f32 %v4032_v26, %v3862_v56  ;;  %v2920_v29 = vpop.f32.mrb[9].mxu0 }
 0x202   : > { %v3123_v33 = vadd.f32 %v3122_v3, %v3091_v59  ;;  %v4085_v31 = vadd.f32 %v2920_v29, %v1738_v38  ;;  %v4033_v45 = vpop.f32.mrb[10].mxu0 }
 0x203   : > { %v4086_v51 = vadd.f32 %v4033_v45, %v3863_v57  ;;  %v2923_v50 = vpop.f32.mrb[11].mxu0  ;;  %v3064_v46 = vadd.f32 %v4084_v2, %v5482_v47 }
 0x204   : > { %v3124_v5 = vadd.f32 %v3123_v33, %v3092_v11  ;;  %v3062_v12 = vadd.f32 %v4085_v31, %v5482_v47  ;;  %v4087_v22 = vadd.f32 %v2923_v50, %v1741_v32 }
 0x205   : > { %v3065_v8 = vadd.f32 %v4086_v51, %v5482_v47  ;;  %v3096_v57 = vmax.f32 %v3064_v46, 0.0 }
 0x206   : > { %v3094_v13 = vmax.f32 %v3062_v12, 0.0  ;;  %v3125_v58 = vadd.f32 %v3124_v5, %v3093_v21  ;;  %v3063_v53 = vadd.f32 %v4087_v22, %v5482_v47 }
 0x207   : > { %v3097_v43 = vmax.f32 %v3065_v8, 0.0 }
 0x208   : > { %v3126_v54 = vadd.f32 %v3125_v58, %v3094_v13  ;;  %v3095_v23 = vmax.f32 %v3063_v53, 0.0  ;;  %v4036_v61 = vpop.f32.mrb[12].mxu0 }
 0x209   : > { %v4088_v56 = vadd.f32 %v4036_v61, %v3866_v0  ;;  %v2936_v38 = vpop.f32.mrb[13].mxu0 }
 0x20a   : > { %v3127_v40 = vadd.f32 %v3126_v54, %v3095_v23  ;;  %v4089_v14 = vadd.f32 %v2936_v38, %v5473_v15  ;;  %v4037_v48 = vpop.f32.mrb[14].mxu0 }
 0x20b   : > { %v4090_v32 = vadd.f32 %v4037_v48, %v5475_v36  ;;  %v2939_v28 = vpop.f32.mrb[15].mxu0  ;;  %v3068_v39 = vadd.f32 %v4088_v56, %v5482_v47 }
 0x20c   : > { %v3128_v19 = vadd.f32 %v3127_v40, %v3096_v57  ;;  %v3066_v10 = vadd.f32 %v4089_v14, %v5482_v47  ;;  %v4091_v52 = vadd.f32 %v2939_v28, %v5477_v9 }
 0x20d   : > { %v3069_v37 = vadd.f32 %v4090_v32, %v5482_v47  ;;  %v3100_v34 = vmax.f32 %v3068_v39, 0.0 }
 0x20e   : > { %v3098_v20 = vmax.f32 %v3066_v10, 0.0  ;;  %v3129_v27 = vadd.f32 %v3128_v19, %v3097_v43  ;;  %v3067_v0 = vadd.f32 %v4091_v52, %v5482_v47 }
 0x20f   : > { %v3101_v25 = vmax.f32 %v3069_v37, 0.0 }
 0x210   : > { %v3130_v63 = vadd.f32 %v3129_v27, %v3098_v20  ;;  %v3099_v15 = vmax.f32 %v3067_v0, 0.0  ;;  %v3904_v18 = vpop.f32.mrb[16].mxu1  ;;  %v4040_v4 = vpop.f32.mrb[16].mxu0 }
 0x211   : > { %v4092_v36 = vadd.f32 %v4040_v4, %v3904_v18  ;;  %v2028_v60 = vpop.f32.mrb[17].mxu1  ;;  %v2952_v16 = vpop.f32.mrb[17].mxu0 }
 0x212   : > { %v3131_v1 = vadd.f32 %v3130_v63, %v3099_v15  ;;  %v4093_v55 = vadd.f32 %v2952_v16, %v2028_v60  ;;  %v3905_v44 = vpop.f32.mrb[18].mxu1  ;;  %v4041_v9 = vpop.f32.mrb[18].mxu0 }
 0x213   : > { %v4094_v30 = vadd.f32 %v4041_v9, %v3905_v44  ;;  %v2031_v35 = vpop.f32.mrb[19].mxu1  ;;  %v2955_v7 = vpop.f32.mrb[19].mxu0  ;;  %v3072_v42 = vadd.f32 %v4092_v36, %v5482_v47 }
 0x214   : > { %v3132_v41 = vadd.f32 %v3131_v1, %v3100_v34  ;;  %v3070_v62 = vadd.f32 %v4093_v55, %v5482_v47  ;;  %v4095_v24 = vadd.f32 %v2955_v7, %v2031_v35 }
 0x215   : > { %v3073_v49 = vadd.f32 %v4094_v30, %v5482_v47  ;;  %v3104_v31 = vmax.f32 %v3072_v42, 0.0 }
 0x216   : > { %v5504_v17 = vadd.f32 %v3132_v41, %v3101_v25  ;;  %v3071_v6 = vadd.f32 %v4095_v24, %v5482_v47  ;;  %v3102_v3 = vmax.f32 %v3070_v62, 0.0 }
 0x217   : > { %v3105_v46 = vmax.f32 %v3073_v49, 0.0 }
 0x218   : > { %v3103_v59 = vmax.f32 %v3071_v6, 0.0  ;;  %v3908_v26 = vpop.f32.mrb[20].mxu1  ;;  %v4044_v2 = vpop.f32.mrb[20].mxu0 }
 0x219   : > { %v4096_v29 = vadd.f32 %v4044_v2, %v3908_v26  ;;  %v2044_v11 = vpop.f32.mrb[21].mxu1  ;;  %v2968_v33 = vpop.f32.mrb[21].mxu0 }
 0x21a   : > { %v3140_v45 = vadd.f32 %v3103_v59, %v3102_v3  ;;  %v4097_v51 = vadd.f32 %v2968_v33, %v2044_v11  ;;  %v3909_v50 = vpop.f32.mrb[22].mxu1  ;;  %v4045_v21 = vpop.f32.mrb[22].mxu0  ;;  %v3134_v11 = vrot.slane %v5504_v17, 4 }
 0x21b   : > { %v4098_v5 = vadd.f32 %v4045_v21, %v3909_v50  ;;  %v2047_v12 = vpop.f32.mrb[23].mxu1  ;;  %v2971_v22 = vpop.f32.mrb[23].mxu0  ;;  %v3076_v54 = vadd.f32 %v4096_v29, %v5482_v47 }
 0x21c   : > { %v3141_v13 = vadd.f32 %v3140_v45, %v3104_v31  ;;  %v3074_v58 = vadd.f32 %v4097_v51, %v5482_v47  ;;  %v4099_v53 = vadd.f32 %v2971_v22, %v2047_v12  ;;  %v3135_v12 = vadd.f32 %v3134_v11, %v5504_v17  ;;  %v4385_v17 = vld [vmem:[%s5580_s3] sm:$0xff] (!%p3572_p5)  }
 0x21d   : > { %v3077_v38 = vadd.f32 %v4098_v5, %v5482_v47  ;;  %v3108_v43 = vmax.f32 %v3076_v54, 0.0 }
 0x21e   : > { %v3106_v8 = vmax.f32 %v3074_v58, 0.0  ;;  %v3142_v23 = vadd.f32 %v3141_v13, %v3105_v46  ;;  %v3075_v61 = vadd.f32 %v4099_v53, %v5482_v47  ;;  %v3136_v53 = vrot.slane %v3135_v12, 2 }
 0x21f   : > { %v3109_v63 = vmax.f32 %v3077_v38, 0.0 }
 0x220   : > { %v3143_v56 = vadd.f32 %v3142_v23, %v3106_v8  ;;  %v3107_v57 = vmax.f32 %v3075_v61, 0.0  ;;  %v3912_v40 = vpop.f32.mrb[24].mxu1  ;;  %v4048_v14 = vpop.f32.mrb[24].mxu0  ;;  %v3137_v23 = vadd.f32 %v3136_v53, %v3135_v12 }
 0x221   : > { %v4100_v48 = vadd.f32 %v4048_v14, %v3912_v40  ;;  %v2060_v32 = vpop.f32.mrb[25].mxu1  ;;  %v2984_v28 = vpop.f32.mrb[25].mxu0 }
 0x222   : > { %v3144_v19 = vadd.f32 %v3143_v56, %v3107_v57  ;;  %v4101_v10 = vadd.f32 %v2984_v28, %v2060_v32  ;;  %v3913_v52 = vpop.f32.mrb[26].mxu1  ;;  %v4049_v39 = vpop.f32.mrb[26].mxu0  ;;  %v3138_v38 = vrot.slane %v3137_v23, 1 }
 0x223   : > { %v4102_v20 = vadd.f32 %v4049_v39, %v3913_v52  ;;  %v2063_v27 = vpop.f32.mrb[27].mxu1  ;;  %v2987_v0 = vpop.f32.mrb[27].mxu0  ;;  %v3080_v4 = vadd.f32 %v4100_v48, %v5482_v47  ;;  %v3118_v48 = vld [vmem:[#allocation2] sm:$0x3]  ;;  %v4388_v52 = vld [vmem:[%s5580_s3 + $0x18] sm:$0xff] (!%p3572_p5)  }
 0x224   : > { %v3145_v37 = vadd.f32 %v3144_v19, %v3108_v43  ;;  %v3078_v15 = vadd.f32 %v4101_v10, %v5482_v47  ;;  %v4103_v18 = vadd.f32 %v2987_v0, %v2063_v27  ;;  %v3139_v14 = vadd.f32 %v3138_v38, %v3137_v23  ;;  %v4386_v19 = vld [vmem:[%s5580_s3 + $0x8] sm:$0xff] (!%p3572_p5)   ;;  %v4387_v10 = vld [vmem:[%s5580_s3 + $0x10] sm:$0xff] (!%p3572_p5)   ;;  %v4389_v39 = vld [vmem:[%s5580_s3 + $0x20] sm:$0xff] (!%p3572_p5)  }
 0x225   : > { %v3081_v1 = vadd.f32 %v4102_v20, %v5482_v47  ;;  %v3112_v25 = vmax.f32 %v3080_v4, 0.0  ;;  %v4432_v43 = vmov (!%p3572_p5), 0.0   ;;  %v4390_v20 = vld [vmem:[%s5580_s3 + $0x28] sm:$0xff] (!%p3572_p5)   ;;  %v4391_v27 = vld [vmem:[%s5580_s3 + $0x30] sm:$0xff] (!%p3572_p5)   ;;  %v4392_v0 = vld [vmem:[%s5580_s3 + $0x38] sm:$0xff] (!%p3572_p5)  }
 0x226   : > { %v3110_v36 = vmax.f32 %v3078_v15, 0.0  ;;  %v3146_v60 = vadd.f32 %v3145_v37, %v3109_v63  ;;  %v3079_v16 = vadd.f32 %v4103_v18, %v5482_v47  ;;  %4054 = vmatprep.subr.bf16.mxu0 (!%p3572_p5), %v4432_v43  ;;  %4070 = vmatprep.mubr.msk.bf16.mxu0 (!%p3572_p5), %vm4433_vm9, %v4432_v43  ;;  %v3573_v15 = vld [vmem:[%s5581_s4] ss:$0 sm:$0xff] (!%p3572_p5) }
 0x227   : > { %v3113_v59 = vmax.f32 %v3081_v1, 0.0  ;;  %4055 = vmatpush3.bf16.msra.mxu0 (!%p3572_p5), %v4385_v17 }
 0x228   : > { %v3147_v34 = vadd.f32 %v3146_v60, %v3110_v36  ;;  %v3111_v55 = vmax.f32 %v3079_v16, 0.0  ;;  %v3916_v44 = vpop.f32.mrb[28].mxu1  ;;  %v4052_v9 = vpop.f32.mrb[28].mxu0  ;;  %4056 = vmatprep.subr.bf16.mxu0 (!%p3572_p5), %v4432_v43 }
 0x229   : > { %v4104_v30 = vadd.f32 %v4052_v9, %v3916_v44  ;;  %v2076_v35 = vpop.f32.mrb[29].mxu1  ;;  %v3000_v7 = vpop.f32.mrb[29].mxu0 }
 0x22a   : > { %v3148_v41 = vadd.f32 %v3147_v34, %v3111_v55  ;;  %v4105_v62 = vadd.f32 %v3000_v7, %v2076_v35  ;;  %v3917_v24 = vpop.f32.mrb[30].mxu1  ;;  %v4053_v42 = vpop.f32.mrb[30].mxu0 }
 0x22b   : > { %v4106_v6 = vadd.f32 %v4053_v42, %v3917_v24  ;;  %v2079_v3 = vpop.f32.mrb[31].mxu1  ;;  %v3003_v49 = vpop.f32.mrb[31].mxu0  ;;  %v3084_v33 = vadd.f32 %v4104_v30, %v5482_v47  ;;  %4057 = vmatpush3.bf16.msra.mxu0 (!%p3572_p5), %v4386_v19 }
 0x22c   : > { %v3149_v26 = vadd.f32 %v3148_v41, %v3112_v25  ;;  %v3082_v2 = vadd.f32 %v4105_v62, %v5482_v47  ;;  %v4107_v29 = vadd.f32 %v3003_v49, %v2079_v3  ;;  %4058 = vmatprep.subr.bf16.mxu0 (!%p3572_p5), %v4432_v43 }
 0x22d   : > { %v3085_v21 = vadd.f32 %v4106_v6, %v5482_v47  ;;  %v3116_v22 = vmax.f32 %v3084_v33, 0.0 }
 0x22e   : > { %v3114_v31 = vmax.f32 %v3082_v2, 0.0  ;;  %v3150_v45 = vadd.f32 %v3149_v26, %v3113_v59  ;;  %v3083_v51 = vadd.f32 %v4107_v29, %v5482_v47 }
 0x22f   : > { %v3117_v13 = vmax.f32 %v3085_v21, 0.0  ;;  %4059 = vmatpush3.bf16.msra.mxu0 (!%p3572_p5), %v4387_v10 }
 0x230   : > { %v3151_v50 = vadd.f32 %v3150_v45, %v3114_v31  ;;  %v3115_v5 = vmax.f32 %v3083_v51, 0.0  ;;  %4060 = vmatprep.subr.bf16.mxu0 (!%p3572_p5), %v4432_v43 }
 0x232   : > { %v3152_v46 = vadd.f32 %v3151_v50, %v3115_v5 }
 0x233   : > { %4061 = vmatpush3.bf16.msra.mxu0 (!%p3572_p5), %v4388_v52 }
 0x234   : > { %v3153_v58 = vadd.f32 %v3152_v46, %v3116_v22  ;;  %4062 = vmatprep.subr.bf16.mxu0 (!%p3572_p5), %v4432_v43 }
 0x236   : > { %v3154_v54 = vadd.f32 %v3153_v58, %v3117_v13 }
 0x237   : > { %4063 = vmatpush3.bf16.msra.mxu0 (!%p3572_p5), %v4389_v39 }
 0x238   : > { %v3155_v8 = vrot.slane %v3154_v54, 4  ;;  %4064 = vmatprep.subr.bf16.mxu0 (!%p3572_p5), %v4432_v43 }
 0x23a   : > { %v3156_v61 = vadd.f32 %v3155_v8, %v3154_v54 }
 0x23b   : > { %4065 = vmatpush3.bf16.msra.mxu0 (!%p3572_p5), %v4390_v20 }
 0x23c   : > { %v3157_v56 = vrot.slane %v3156_v61, 2  ;;  %4066 = vmatprep.subr.bf16.mxu0 (!%p3572_p5), %v4432_v43 }
 0x23e   : > { %v3158_v57 = vadd.f32 %v3157_v56, %v3156_v61 }
 0x23f   : > { %4067 = vmatpush3.bf16.msra.mxu0 (!%p3572_p5), %v4391_v27 }
 0x240   : > { %v3159_v40 = vrot.slane %v3158_v57, 1  ;;  %4068 = vmatprep.subr.bf16.mxu0 (!%p3572_p5), %v4432_v43 }
 0x241   : > { %3171 = sbr.rel (%p3572_p5) target bundleno = 808 (0x328), region = 48 }
 0x242   : > { %v3160_v47 = vadd.f32 %v3159_v40, %v3158_v57 }
 0x243   : > { %4069 = vmatpush3.bf16.msra.mxu0 (!%p3572_p5), %v4392_v0 }
 0x244   : > { %v3164_v32 = vsel %vm3163_vm8, %v3160_v47, %v3139_v14 }
 0x245   : > { %v3166_v28 = vadd.f32 %v3164_v32, %v3118_v48 }
 0x247   : > { %3167 = vst [vmem:[#allocation2] sm:$0x3] %v3166_v28 }
 0x24e   : > { %v3172_v63 = vld [vmem:[#allocation2] sm:$0x3] }
 0x24f   : > { %v3173_v37 = vpack.c.bf16 %v3172_v63, %v3172_v63 }
 0x251   : > { %4071 = vmatmul.mubr.bf16.vlgmr.msra.gmra.mrb[0].mxu0 %v3173_v37 }
 0x324   : > { %v3279_v18 = vpop.f32.mrb[0].mxu0 }
 0x325   : > { %v3280_v4 = vadd.f32 %v3573_v15, %v3279_v18  ;;  %v4072_v36 = vpop.f32.mrb[1].mxu0 }
 0x326   : > { %v3282_v60 = vpop.f32.mrb[2].mxu0 }
 0x327   : > { %3285 = vst [vmem:[#allocation3] sm:$0x3] %v3280_v4  ;;  %v4073_v16 = vpop.f32.mrb[3].mxu0 }
 0x328 PF: > { %p4347_p6 = scmp.eq.s32.totalorder %s4471_s19, 1  ;;  %s4434_s17 = smov [#allocation3]  }
 0x329   : > { %s3293_s20 = sshll.u32 %s4434_s17, 4  ;;  %s3294_s20 = int_to_ptr.vmem [resolvable:$true] %s3293_s20 }
 0x32a   : > { %s4393_s21 = scalar_lea.vmem %s3294_s20, 32  ;;  %p4400_p10 = scmp.lt.s32.totalorder %s3294_s20, %s3294_s20 }
 0x32b   : > { %p4394_p7 = scmp.ne.s32.totalorder %s3294_s20, %s4393_s21  ;;  %p4401_p11 = scmp.lt.s32.totalorder %s4393_s21, %s4393_s21 }
 0x32d   : > { %p4395_p8 = pnand %p4394_p7, %p4347_p6  ;;  %p4402_p12 = por %p4401_p11, %p4400_p10 }
 0x32f   : > { %p4396_p9 = pneg %p4395_p8 }
 0x331   : > { %p4403_p13 = pnand %p4402_p12, %p4396_p9 }
 0x333   : > { %4406 = shalt.err (!%p4403_p13)
}
 0x334   : > { %s4407_s24 = scalar_lea.hbm %s5582_s5, 32 }
 0x335   : > { %p4408_p0 = scmp.ne.s32.totalorder %s5582_s5, %s4407_s24  ;;  %p4413_p3 = scmp.lt.u32.totalorder %s4407_s24, %s5582_s5 }
 0x337   : > { %p4409_p1 = pnand %p4408_p0, %p4347_p6 }
 0x339   : > { %p4410_p2 = pneg %p4409_p1 }
 0x33b   : > { %p4415_p4 = pnand %p4413_p3, %p4410_p2 }
 0x33d   : > { %4418 = shalt.err (!%p4415_p4)
}
 0x33e   : > { %4344 = dma.vmem_to_hbm [thread:$0]  (%p4347_p6), %s3294_s20, 32, %s5582_s5, [#allocation4]  }
 0x33f   : > { %4424 = dma.done.wait (%p4347_p6), [#allocation4], 32  }
 0x340   : > { %4426 = vsyncadd (%p4347_p6), [#allocation4], 4294967264 }
 0x341 PF: > { %s16_s18 = sadd.s32 1, %s4429_s18  }
 0x342   : > { %p13_p5 = scmp.ge.s32.totalorder %s16_s18, 4  }
 0x344   :  { %15 = sbr.rel (!%p13_p5) target bundleno = 1 (0x1), region = 83 }
 0x34b   :  { %3306 = vsyncpa [#allocation4], 1 }
 0x34c   :  { %3308 = vsyncpa [#allocation4 + $0x1], 1 }

</bundles_post_ra>
